<compile_context>
chip_gen: v6e
topology: v6e:2x2x1
jax: 0.10.0
libtpu: 0.0.40
codegen_flags: <defaults>
</compile_context>

<pallas_src>
import functools

import numpy as np
import jax
import jax.numpy as jnp
from jax.experimental import pallas as pl
from jax.experimental.pallas import tpu as pltpu


def _round_up(x, m):
    return (x + m - 1) // m * m


def _cdiv(a, b):
    return -(-a // b)


# ---------------------------------------------------------------------------
# Pallas kernel 1: tiled MXU matmul with fused bias / tanh epilogue
# ---------------------------------------------------------------------------
def _mm_kernel(p_ref, w_ref, b_ref, o_ref, *, post_act):
    """Single-K-tile path: o = post_act(P_tile @ W_tile + b)."""
    out = jnp.dot(p_ref[...], w_ref[...], preferred_element_type=jnp.float32)
    out = out + b_ref[...]
    if post_act == "tanh":
        out = jnp.tanh(out)
    o_ref[...] = out.astype(o_ref.dtype)


def _mm_acc_kernel(p_ref, w_ref, b_ref, o_ref, acc_ref, *, post_act):
    """Multi-K-tile fallback: f32 VMEM accumulator, epilogue on last k."""
    @pl.when(pl.program_id(2) == 0)
    def _():
        acc_ref[...] = jnp.zeros_like(acc_ref)

    acc_ref[...] += jnp.dot(p_ref[...], w_ref[...],
                            preferred_element_type=jnp.float32)

    @pl.when(pl.program_id(2) == pl.num_programs(2) - 1)
    def _():
        out = acc_ref[...] + b_ref[...]
        if post_act == "tanh":
            out = jnp.tanh(out)
        o_ref[...] = out.astype(o_ref.dtype)


def matmul_bias_act(p, w, b, *, post_act="none", out_dtype=jnp.bfloat16,
                    tm_skinny=512, tm_wide=256, tk_max=2048, tn_max=256):
    """o = post_act(P @ W + b), tiled & pipelined on the MXU.

    P:(M,K) bf16 patches, W:(K,N) bf16 weights, b:(N,) f32 or None.
    Returns (M,N) in `out_dtype` (f32 accumulation inside).
    """
    M, K = p.shape
    Kw, Nc = w.shape
    assert Kw == K

    TN = min(tn_max, _round_up(Nc, 128))          # lane-dense output (>=128)
    TK = min(tk_max, _round_up(K, 128))
    Np = _round_up(Nc, TN)
    Kp = _round_up(K, TK)
    # Tall-skinny (single N tile) -> larger M tile; always leave >=2 M tiles
    # when M allows so the "parallel" M axis can split across v7x TensorCores.
    tm_cap = tm_skinny if Np == TN else tm_wide
    TM = max(16, min(tm_cap, _round_up(_cdiv(M, 2), 16)))
    Mp = _round_up(M, TM)

    p_pad = jnp.pad(p.astype(jnp.bfloat16), ((0, Mp - M), (0, Kp - K)))
    w_pad = jnp.pad(w.astype(jnp.bfloat16), ((0, Kp - K), (0, Np - Nc)))
    if b is None:
        b_pad = jnp.zeros((1, Np), jnp.float32)
    else:
        b_pad = jnp.pad(b.astype(jnp.float32), (0, Np - Nc)).reshape(1, Np)

    if Kp == TK:
        # K fits a single tile (true for every layer of this model): 2-D grid,
        # no accumulator scratch, no init / gated-epilogue phases.
        out = pl.pallas_call(
            functools.partial(_mm_kernel, post_act=post_act),
            out_shape=jax.ShapeDtypeStruct((Mp, Np), out_dtype),
            grid_spec=pltpu.PrefetchScalarGridSpec(
                num_scalar_prefetch=0,
                grid=(Mp // TM, Np // TN),
                in_specs=[
                    pl.BlockSpec((TM, TK), lambda i, j: (i, 0)),
                    pl.BlockSpec((TK, TN), lambda i, j: (0, j)),
                    pl.BlockSpec((1, TN), lambda i, j: (0, j)),
                ],
                out_specs=pl.BlockSpec((TM, TN), lambda i, j: (i, j))),
            compiler_params=pltpu.CompilerParams(
                dimension_semantics=("parallel", "parallel")),
        )(p_pad, w_pad, b_pad)
    else:
        out = pl.pallas_call(
            functools.partial(_mm_acc_kernel, post_act=post_act),
            out_shape=jax.ShapeDtypeStruct((Mp, Np), out_dtype),
            grid_spec=pltpu.PrefetchScalarGridSpec(
                num_scalar_prefetch=0,
                grid=(Mp // TM, Np // TN, Kp // TK),
                in_specs=[
                    pl.BlockSpec((TM, TK), lambda i, j, k: (i, k)),
                    pl.BlockSpec((TK, TN), lambda i, j, k: (k, j)),
                    pl.BlockSpec((1, TN), lambda i, j, k: (0, j)),
                ],
                out_specs=pl.BlockSpec((TM, TN), lambda i, j, k: (i, j)),
                scratch_shapes=[pltpu.VMEM((TM, TN), jnp.float32)]),
            compiler_params=pltpu.CompilerParams(
                dimension_semantics=("parallel", "parallel", "arbitrary")),
        )(p_pad, w_pad, b_pad)
    return out[:M, :Nc]


# ---------------------------------------------------------------------------
# Pallas kernel 2: InstanceNorm3d(1, eps=1e-3, affine=True), per sample
# ---------------------------------------------------------------------------
def _instance_norm_kernel(g_ref, b_ref, x_ref, o_ref, *, inv_count, eps):
    x = x_ref[...].astype(jnp.float32)        # (1, rows, 128) lane-dense slab
    s1 = jnp.sum(x)
    s2 = jnp.sum(x * x)                       # zero padding contributes 0
    mean = s1 * inv_count
    var = s2 * inv_count - mean * mean        # biased variance (PyTorch IN)
    inv = jax.lax.rsqrt(var + eps)
    o_ref[...] = ((x - mean) * (inv * g_ref[0]) + b_ref[0]).astype(o_ref.dtype)


def instance_norm(x_nhwc, gamma, beta, eps=1e-3):
    """Per-sample normalization over (H,W,C) with scalar affine params."""
    # TODO(synk): for production resolutions on v7x (64 MiB VMEM) tile the
    # per-sample slab over rows with a two-pass stats/normalize structure.
    N, H, W, C = x_nhwc.shape
    count = H * W * C
    L = 128
    rows = _cdiv(count, L)
    xf = x_nhwc.reshape(N, count)
    xf = jnp.pad(xf, ((0, 0), (0, rows * L - count)))
    xf = xf.reshape(N, rows, L)               # lane-dense, all 8 sublanes used
    kernel = functools.partial(_instance_norm_kernel,
                               inv_count=1.0 / float(count), eps=float(eps))
    out = pl.pallas_call(
        kernel,
        out_shape=jax.ShapeDtypeStruct((N, rows, L), x_nhwc.dtype),
        grid=(N,),
        in_specs=[
            pl.BlockSpec(memory_space=pltpu.MemorySpace.SMEM),
            pl.BlockSpec(memory_space=pltpu.MemorySpace.SMEM),
            pl.BlockSpec((1, rows, L), lambda n: (n, 0, 0)),
        ],
        out_specs=pl.BlockSpec((1, rows, L), lambda n: (n, 0, 0)),
        compiler_params=pltpu.CompilerParams(dimension_semantics=("parallel",)),
    )(gamma, beta, xf)
    return out.reshape(N, rows * L)[:, :count].reshape(N, H, W, C)


# ---------------------------------------------------------------------------
# JAX glue: activations, im2col, conv, phase-decomposed transposed conv
# ---------------------------------------------------------------------------
def _apply_act(x, act):
    if act == "relu":
        return jnp.maximum(x, 0)
    if act == "leaky":                         # LeakyReLU(0.2): 2 VPU ops
        return jnp.maximum(x, 0.2 * x)
    return x


def _im2col(x_nhwc, kh, kw, stride, pad):
    # TODO(synk): patches are still materialized by XLA in HBM; a further step
    # is building the patch tile in-kernel from (N, oh_tile, W, C) blocks.
    x = jnp.pad(x_nhwc, ((0, 0), (pad, pad), (pad, pad), (0, 0)))
    N, Hp, Wp, C = x.shape
    oh = (Hp - kh) // stride + 1
    ow = (Wp - kw) // stride + 1
    cols = []
    for i in range(kh):
        for j in range(kw):
            cols.append(x[:, i:i + stride * oh:stride, j:j + stride * ow:stride, :])
    patches = jnp.stack(cols, axis=3)          # (N, oh, ow, kh*kw, C)
    return patches.reshape(N * oh * ow, kh * kw * C), oh, ow


def conv2d_mm(x_nhwc, w_mat, bias, *, kh, kw, cout, stride, pad,
              pre_act="none", post_act="none", out_dtype=jnp.bfloat16):
    """Conv2d as im2col + one Pallas matmul; pre-activation hoisted out."""
    x = _apply_act(x_nhwc, pre_act)            # single elementwise pass (bf16)
    patches, oh, ow = _im2col(x, kh, kw, stride, pad)
    out = matmul_bias_act(patches, w_mat, bias,
                          post_act=post_act, out_dtype=out_dtype)
    return out.reshape(x_nhwc.shape[0], oh, ow, cout)


def conv_transpose_crop(x_nhwc, w_mat, cout, pre_act="relu"):
    """ConvTranspose2d(k=4, s=2, bias=False) + Cropping2D(1).

    Sub-pixel (phase) decomposition: the cropped output at (2m+py, 2n+px) only
    uses 2x2 of the 4x4 kernel taps, so all four phases come from ONE stride-1
    3x3 conv on the original input with a (4*cout)-channel combined weight
    (pre-built in prepare_params), followed by a pixel-shuffle interleave.
    """
    # TODO(synk): the pixel shuffle could be folded into the matmul output
    # index_map (four lane-dense phase blocks) to avoid this bf16 transpose.
    N, H, W, _ = x_nhwc.shape
    out = conv2d_mm(x_nhwc, w_mat, None, kh=3, kw=3, cout=4 * cout,
                    stride=1, pad=1, pre_act=pre_act)
    out = out.reshape(N, H, W, 2, 2, cout)
    out = jnp.transpose(out, (0, 1, 3, 2, 4, 5)).reshape(N, 2 * H, 2 * W, cout)
    return out


# ---------------------------------------------------------------------------
# Weight preparation (done ONCE, outside the jitted forward)
# ---------------------------------------------------------------------------
def _conv_w_to_mat_f32(w_oihw):
    """OIHW conv weight -> (KH*KW*Cin, Cout) matmul matrix (matches im2col)."""
    Cout, Cin, KH, KW = w_oihw.shape
    return jnp.transpose(w_oihw, (2, 3, 1, 0)).reshape(KH * KW * Cin, Cout)


def _phase_weight_f32(w_iohw):
    """ConvTranspose2d(k4,s2)+crop1 -> stride-1 3x3 phase-conv matmul weight.

    Window row r (covering x[m-1], x[m], x[m+1]) maps to ConvT kernel row ky:
      phase py=0: r0<-ky3, r1<-ky1, r2<-none
      phase py=1: r0<-none, r1<-ky2, r2<-ky0
    (same along columns).  Pure gather + mask: exact, no matmul rounding.
    Returns (9*Cin, 4*Cout) with output channels ordered (py, px, co).
    """
    Cin, Cout, _, _ = w_iohw.shape
    ky = jnp.asarray([[3, 1, 0], [0, 2, 0]], jnp.int32)          # [phase, r]
    msk = jnp.asarray([[1., 1., 0.], [0., 1., 1.]], jnp.float32)  # [phase, r]
    # wsel[ci, co, py, r, px, s] = w[ci, co, ky[py,r], ky[px,s]]
    wsel = w_iohw[:, :, ky[:, :, None, None], ky[None, None, :, :]]
    wsel = wsel * (msk[:, :, None, None] * msk[None, None, :, :])
    # -> (r, s, ci, py, px, co) -> (9*Cin, 4*Cout)
    wm = jnp.transpose(wsel, (3, 5, 0, 2, 4, 1)).reshape(9 * Cin, 4 * Cout)
    return wm


def init_params(key, input_nc, nfilters_enc, nfilters_dec, num_skips=1):
    """Raw parameters in PyTorch layout (OIHW / IOHW), f32."""
    params = {"enc": [], "dec": []}
    prev = input_nc
    for i, nf in enumerate(nfilters_enc):
        key, k1, k2 = jax.random.split(key, 3)
        if i == 0:   # Conv2d(input_nc, nf, 3, padding=1) with bias
            params["enc"].append({
                "w": 0.1 * jax.random.normal(k1, (nf, prev, 3, 3), jnp.float32),
                "b": 0.01 * jax.random.normal(k2, (nf,), jnp.float32),
            })
        else:        # Block(down=True): LeakyReLU -> Conv2d(k4,s2,p1,no bias) [-> IN]
            blk = {"w": 0.1 * jax.random.normal(k1, (nf, prev, 4, 4), jnp.float32)}
            if i != len(nfilters_enc) - 1:           # bn=True except last block
                blk["g"] = jnp.ones((1,), jnp.float32)
                blk["be"] = jnp.zeros((1,), jnp.float32)
            params["enc"].append(blk)
        prev = nf

    for i, nf in enumerate(nfilters_dec):
        key, k1, k2 = jax.random.split(key, 3)
        if i == 0:
            cin = nfilters_enc[-1]
            params["dec"].append({
                "w": 0.1 * jax.random.normal(k1, (cin, nf, 4, 4), jnp.float32),
                "g": jnp.ones((1,), jnp.float32),
                "be": jnp.zeros((1,), jnp.float32),
            })
        elif i == len(nfilters_dec) - 1:             # ReLU + Conv2d(k3,p1,bias)
            cin = num_skips * nfilters_enc[-(i + 1)] + nfilters_dec[i - 1]
            params["dec"].append({
                "w": 0.1 * jax.random.normal(k1, (nf, cin, 3, 3), jnp.float32),
                "b": 0.01 * jax.random.normal(k2, (nf,), jnp.float32),
            })
        else:                                        # Block(down=False): ReLU->ConvT->crop->IN
            cin = num_skips * nfilters_enc[-(i + 1)] + nfilters_dec[i - 1]
            params["dec"].append({
                "w": 0.1 * jax.random.normal(k1, (cin, nf, 4, 4), jnp.float32),
                "g": jnp.ones((1,), jnp.float32),
                "be": jnp.zeros((1,), jnp.float32),
            })
    return params


def prepare_params(params, nfilters_enc, nfilters_dec):
    """Pre-transform all conv weights to bf16 matmul matrices (runs once)."""
    E, D = len(nfilters_enc), len(nfilters_dec)
    prep = {"enc": [], "dec": []}
    for i, p in enumerate(params["enc"]):
        q = {"wm": _conv_w_to_mat_f32(p["w"]).astype(jnp.bfloat16)}
        if i == 0:
            q["b"] = p["b"].astype(jnp.float32)
        elif i != E - 1:
            q["g"], q["be"] = p["g"], p["be"]
        prep["enc"].append(q)
    for i, p in enumerate(params["dec"]):
        if i < D - 1:   # phase-decomposed ConvTranspose blocks
            q = {"wm": _phase_weight_f32(p["w"]).astype(jnp.bfloat16),
                 "g": p["g"], "be": p["be"]}
        else:           # final 3x3 conv with bias
            q = {"wm": _conv_w_to_mat_f32(p["w"]).astype(jnp.bfloat16),
                 "b": p["b"].astype(jnp.float32)}
        prep["dec"].append(q)
    return prep


# ---------------------------------------------------------------------------
# Generator forward (mirrors the PyTorch module structure)
# ---------------------------------------------------------------------------
def generator_forward(prep, x_nchw, *, nfilters_enc, nfilters_dec):
    E, D = len(nfilters_enc), len(nfilters_dec)
    out = jnp.transpose(x_nchw, (0, 2, 3, 1)).astype(jnp.bfloat16)  # NCHW->NHWC

    # ----- encoder -----
    skips = []
    for i in range(E):
        p = prep["enc"][i]
        nf = nfilters_enc[i]
        if i == 0:
            out = conv2d_mm(out, p["wm"], p["b"], kh=3, kw=3, cout=nf,
                            stride=1, pad=1)
        else:
            out = conv2d_mm(out, p["wm"], None, kh=4, kw=4, cout=nf,
                            stride=2, pad=1, pre_act="leaky")
            if i != E - 1:
                out = instance_norm(out, p["g"], p["be"])
        skips.append(out)

    # ----- decoder -----
    for i in range(D):
        p = prep["dec"][i]
        nf = nfilters_dec[i]
        if i == 0:
            out = conv_transpose_crop(skips[-1], p["wm"], nf, pre_act="relu")
            out = instance_norm(out, p["g"], p["be"])
            # TODO(synk): Dropout2d is treated as eval-mode identity.
        elif i < D - 1:
            # TODO(synk): concat kept (in bf16); could be removed entirely by
            # splitting the contraction across the two inputs.
            out = jnp.concatenate([out, skips[-(i + 1)]], axis=-1)
            out = conv_transpose_crop(out, p["wm"], nf, pre_act="relu")
            out = instance_norm(out, p["g"], p["be"])
        else:
            out = jnp.concatenate([out, skips[-(i + 1)]], axis=-1)
            # ReLU (hoisted) -> Conv2d(k3,p1,bias) -> Tanh fused in the matmul
            out = conv2d_mm(out, p["wm"], p["b"], kh=3, kw=3, cout=nf,
                            stride=1, pad=1, pre_act="relu",
                            post_act="tanh", out_dtype=jnp.float32)

    return jnp.transpose(out, (0, 3, 1, 2))                        # NHWC->NCHW


# ---------------------------------------------------------------------------
# Unit test of the ConvTranspose phase decomposition (f32, no Pallas/bf16)
# ---------------------------------------------------------------------------
def _selftest_phase_decomposition():
    rng = np.random.RandomState(0)
    N, Cin, Cout, H, W = 2, 5, 7, 6, 6
    x = rng.randn(N, Cin, H, W).astype(np.float32)
    w = rng.randn(Cin, Cout, 4, 4).astype(np.float32)
    # Reference: direct transposed conv (stride 2, k=4) then crop 1
    full = np.zeros((N, Cout, 2 * H + 2, 2 * W + 2), np.float32)
    for ky in range(4):
        for kx in range(4):
            c = np.einsum("nchw,cd->ndhw", x, w[:, :, ky, kx])
            full[:, :, ky:ky + 2 * H:2, kx:kx + 2 * W:2] += c
    ref = full[:, :, 1:-1, 1:-1]
    # Phase path (same transform + im2col + shuffle as the kernel path, f32)
    wm = np.asarray(_phase_weight_f32(jnp.asarray(w)), np.float32)
    x_nhwc = jnp.asarray(np.transpose(x, (0, 2, 3, 1)))
    patches, _, _ = _im2col(x_nhwc, 3, 3, 1, 1)
    out = np.asarray(patches, np.float32) @ wm
    out = out.reshape(N, H, W, 2, 2, Cout)
    out = np.transpose(out, (0, 1, 3, 2, 4, 5)).reshape(N, 2 * H, 2 * W, Cout)
    got = np.transpose(out, (0, 3, 1, 2))
    assert np.allclose(got, ref, atol=1e-3, rtol=1e-3), np.abs(got - ref).max()


# ---------------------------------------------------------------------------
if __name__ == "__main__":
    _selftest_phase_decomposition()

    input_nc = 4
    nfilters_enc = (8, 16, 32)
    nfilters_dec = (32, 16, 3)
    N, H, W = 2, 16, 16

    key = jax.random.PRNGKey(0)
    kp, kx = jax.random.split(key)
    params = init_params(kp, input_nc, nfilters_enc, nfilters_dec)
    prep = prepare_params(params, nfilters_enc, nfilters_dec)   # once, eager
    x = jax.random.normal(kx, (N, input_nc, H, W), jnp.float32)

    fwd = jax.jit(functools.partial(generator_forward,
                                    nfilters_enc=nfilters_enc,
                                    nfilters_dec=nfilters_dec))
    out = fwd(prep, x)
    jax.block_until_ready(out)

    assert out.shape == (N, nfilters_dec[-1], H, W), out.shape
    assert bool(jnp.all(jnp.isfinite(out)))
    assert bool(jnp.all(jnp.abs(out) <= 1.0))   # tanh output range
    print("KERNEL_OK")
</pallas_src>

<mosaic_0001>
module attributes {stable_mosaic.version = 11 : i64} {
  func.func @_mm_kernel(%arg0: i32, %arg1: i32, %arg2: memref<256x128xbf16, #tpu.memory_space<vmem>>, %arg3: memref<128x128xbf16, #tpu.memory_space<vmem>>, %arg4: memref<1x128xf32, #tpu.memory_space<vmem>>, %arg5: memref<256x128xbf16, #tpu.memory_space<vmem>>) attributes {dimension_semantics = [#tpu.dimension_semantics<parallel>, #tpu.dimension_semantics<parallel>], iteration_bounds = array<i64: 2, 1>, scalar_prefetch = 0 : i64, scratch_operands = 0 : i64, tpu.core_type = #tpu.core_type<tc>, window_params = [{transform_indices = @transform_0, window_bounds = array<i64: 256, 128>}, {transform_indices = @transform_1, window_bounds = array<i64: 128, 128>}, {transform_indices = @transform_2, window_bounds = array<i64: 1, 128>}, {transform_indices = @transform_3, window_bounds = array<i64: 256, 128>}]} {
    %c0 = arith.constant 0 : index
    %c0_0 = arith.constant 0 : index
    %0 = vector.load %arg2[%c0, %c0_0] : memref<256x128xbf16, #tpu.memory_space<vmem>>, vector<256x128xbf16>
    %c0_1 = arith.constant 0 : index
    %c0_2 = arith.constant 0 : index
    %1 = vector.load %arg3[%c0_1, %c0_2] : memref<128x128xbf16, #tpu.memory_space<vmem>>, vector<128x128xbf16>
    %cst = arith.constant dense<0.000000e+00> : vector<256x128xf32>
    %2 = tpu.matmul %0, %1, %cst {dimension_numbers = #tpu.dot_dimension_numbers<[1], [0], [0], [1], [0, 0, 1, 1], [], []>} : vector<256x128xbf16>, vector<128x128xbf16>, vector<256x128xf32> -> vector<256x128xf32>
    %c0_3 = arith.constant 0 : index
    %c0_4 = arith.constant 0 : index
    %3 = vector.load %arg4[%c0_3, %c0_4] : memref<1x128xf32, #tpu.memory_space<vmem>>, vector<1x128xf32>
    %4 = vector.broadcast %3 : vector<1x128xf32> to vector<256x128xf32>
    %5 = arith.addf %2, %4 : vector<256x128xf32>
    %6 = arith.truncf %5 : vector<256x128xf32> to vector<256x128xbf16>
    %c0_5 = arith.constant 0 : index
    %c0_6 = arith.constant 0 : index
    %7 = vector.load %arg5[%c0_5, %c0_6] : memref<256x128xbf16, #tpu.memory_space<vmem>>, vector<256x128xbf16>
    tpu.vector_store %arg5[%c0_5, %c0_6], %6 {strides = array<i32>} : memref<256x128xbf16, #tpu.memory_space<vmem>>, vector<256x128xbf16>,
    return
  }
  func.func @transform_0(%arg0: i32, %arg1: i32) -> (i32, i32) {
    %c0_i32 = arith.constant 0 : i32
    %c0_i32_0 = arith.constant 0 : i32
    return %arg0, %c0_i32 : i32, i32
  }
  func.func @transform_1(%arg0: i32, %arg1: i32) -> (i32, i32) {
    %c0_i32 = arith.constant 0 : i32
    %c0_i32_0 = arith.constant 0 : i32
    return %c0_i32, %arg1 : i32, i32
  }
  func.func @transform_2(%arg0: i32, %arg1: i32) -> (i32, i32) {
    %c0_i32 = arith.constant 0 : i32
    %c0_i32_0 = arith.constant 0 : i32
    return %c0_i32, %arg1 : i32, i32
  }
  func.func @transform_3(%arg0: i32, %arg1: i32) -> (i32, i32) {
    %c0_i32 = arith.constant 0 : i32
    return %arg0, %arg1 : i32, i32
  }
}

module attributes {stable_mosaic.version = 11 : i64} {
  func.func @_mm_kernel(%arg0: i32, %arg1: i32, %arg2: memref<64x128xbf16, #tpu.memory_space<vmem>>, %arg3: memref<128x128xbf16, #tpu.memory_space<vmem>>, %arg4: memref<1x128xf32, #tpu.memory_space<vmem>>, %arg5: memref<64x128xbf16, #tpu.memory_space<vmem>>) attributes {dimension_semantics = [#tpu.dimension_semantics<parallel>, #tpu.dimension_semantics<parallel>], iteration_bounds = array<i64: 2, 1>, scalar_prefetch = 0 : i64, scratch_operands = 0 : i64, tpu.core_type = #tpu.core_type<tc>, window_params = [{transform_indices = @transform_0, window_bounds = array<i64: 64, 128>}, {transform_indices = @transform_1, window_bounds = array<i64: 128, 128>}, {transform_indices = @transform_2, window_bounds = array<i64: 1, 128>}, {transform_indices = @transform_3, window_bounds = array<i64: 64, 128>}]} {
    %c0 = arith.constant 0 : index
    %c0_0 = arith.constant 0 : index
    %0 = vector.load %arg2[%c0, %c0_0] : memref<64x128xbf16, #tpu.memory_space<vmem>>, vector<64x128xbf16>
    %c0_1 = arith.constant 0 : index
    %c0_2 = arith.constant 0 : index
    %1 = vector.load %arg3[%c0_1, %c0_2] : memref<128x128xbf16, #tpu.memory_space<vmem>>, vector<128x128xbf16>
    %cst = arith.constant dense<0.000000e+00> : vector<64x128xf32>
    %2 = tpu.matmul %0, %1, %cst {dimension_numbers = #tpu.dot_dimension_numbers<[1], [0], [0], [1], [0, 0, 1, 1], [], []>} : vector<64x128xbf16>, vector<128x128xbf16>, vector<64x128xf32> -> vector<64x128xf32>
    %c0_3 = arith.constant 0 : index
    %c0_4 = arith.constant 0 : index
    %3 = vector.load %arg4[%c0_3, %c0_4] : memref<1x128xf32, #tpu.memory_space<vmem>>, vector<1x128xf32>
    %4 = vector.broadcast %3 : vector<1x128xf32> to vector<64x128xf32>
    %5 = arith.addf %2, %4 : vector<64x128xf32>
    %6 = arith.truncf %5 : vector<64x128xf32> to vector<64x128xbf16>
    %c0_5 = arith.constant 0 : index
    %c0_6 = arith.constant 0 : index
    %7 = vector.load %arg5[%c0_5, %c0_6] : memref<64x128xbf16, #tpu.memory_space<vmem>>, vector<64x128xbf16>
    tpu.vector_store %arg5[%c0_5, %c0_6], %6 {strides = array<i32>} : memref<64x128xbf16, #tpu.memory_space<vmem>>, vector<64x128xbf16>,
    return
  }
  func.func @transform_0(%arg0: i32, %arg1: i32) -> (i32, i32) {
    %c0_i32 = arith.constant 0 : i32
    %c0_i32_0 = arith.constant 0 : i32
    return %arg0, %c0_i32 : i32, i32
  }
  func.func @transform_1(%arg0: i32, %arg1: i32) -> (i32, i32) {
    %c0_i32 = arith.constant 0 : i32
    %c0_i32_0 = arith.constant 0 : i32
    return %c0_i32, %arg1 : i32, i32
  }
  func.func @transform_2(%arg0: i32, %arg1: i32) -> (i32, i32) {
    %c0_i32 = arith.constant 0 : i32
    %c0_i32_0 = arith.constant 0 : i32
    return %c0_i32, %arg1 : i32, i32
  }
  func.func @transform_3(%arg0: i32, %arg1: i32) -> (i32, i32) {
    %c0_i32 = arith.constant 0 : i32
    return %arg0, %arg1 : i32, i32
  }
}

module attributes {stable_mosaic.version = 11 : i64} {
  func.func @_instance_norm_kernel(%arg0: i32, %arg1: memref<1xf32, #tpu.memory_space<smem>>, %arg2: memref<1xf32, #tpu.memory_space<smem>>, %arg3: memref<1x8x128xbf16, #tpu.memory_space<vmem>>, %arg4: memref<1x8x128xbf16, #tpu.memory_space<vmem>>) attributes {dimension_semantics = [#tpu.dimension_semantics<parallel>], iteration_bounds = array<i64: 2>, scalar_prefetch = 0 : i64, scratch_operands = 0 : i64, tpu.core_type = #tpu.core_type<tc>, window_params = [{transform_indices = @transform_0, window_bounds = array<i64: 1>}, {transform_indices = @transform_1, window_bounds = array<i64: 1>}, {transform_indices = @transform_2, window_bounds = array<i64: 1, 8, 128>}, {transform_indices = @transform_3, window_bounds = array<i64: 1, 8, 128>}]} {
    %c0 = arith.constant 0 : index
    %c0_0 = arith.constant 0 : index
    %c0_1 = arith.constant 0 : index
    %0 = vector.load %arg3[%c0, %c0_0, %c0_1] : memref<1x8x128xbf16, #tpu.memory_space<vmem>>, vector<1x8x128xbf16>
    %1 = arith.extf %0 : vector<1x8x128xbf16> to vector<1x8x128xf32>
    %2 = vector.shape_cast %1 : vector<1x8x128xf32> to vector<1x1x8x128xf32>
    %cst = arith.constant dense<0.000000e+00> : vector<1xf32>
    %3 = vector.multi_reduction <add>, %2, %cst [1, 2, 3] : vector<1x1x8x128xf32> to vector<1xf32>
    %4 = vector.shape_cast %3 : vector<1xf32> to vector<1x1x1x1xf32>
    %5 = vector.extract %4[0, 0, 0, 0] : f32 from vector<1x1x1x1xf32>
    %6 = arith.mulf %1, %1 : vector<1x8x128xf32>
    %7 = vector.shape_cast %6 : vector<1x8x128xf32> to vector<1x1x8x128xf32>
    %cst_2 = arith.constant dense<0.000000e+00> : vector<1xf32>
    %8 = vector.multi_reduction <add>, %7, %cst_2 [1, 2, 3] : vector<1x1x8x128xf32> to vector<1xf32>
    %9 = vector.shape_cast %8 : vector<1xf32> to vector<1x1x1x1xf32>
    %10 = vector.extract %9[0, 0, 0, 0] : f32 from vector<1x1x1x1xf32>
    %cst_3 = arith.constant 9.765625E-4 : f32
    %11 = arith.mulf %5, %cst_3 : f32
    %cst_4 = arith.constant 9.765625E-4 : f32
    %12 = arith.mulf %10, %cst_4 : f32
    %13 = arith.mulf %11, %11 : f32
    %14 = arith.subf %12, %13 : f32
    %cst_5 = arith.constant 1.000000e-03 : f32
    %15 = arith.addf %14, %cst_5 : f32
    %16 = math.rsqrt %15 : f32
    %17 = vector.broadcast %11 : f32 to vector<1x8x128xf32>
    %18 = arith.subf %1, %17 : vector<1x8x128xf32>
    %c0_6 = arith.constant 0 : index
    %19 = memref.load %arg1[%c0_6] : memref<1xf32, #tpu.memory_space<smem>>
    %20 = arith.mulf %16, %19 : f32
    %21 = vector.broadcast %20 : f32 to vector<1x8x128xf32>
    %22 = arith.mulf %18, %21 : vector<1x8x128xf32>
    %c0_7 = arith.constant 0 : index
    %23 = memref.load %arg2[%c0_7] : memref<1xf32, #tpu.memory_space<smem>>
    %24 = vector.broadcast %23 : f32 to vector<1x8x128xf32>
    %25 = arith.addf %22, %24 : vector<1x8x128xf32>
    %26 = arith.truncf %25 : vector<1x8x128xf32> to vector<1x8x128xbf16>
    %c0_8 = arith.constant 0 : index
    %c0_9 = arith.constant 0 : index
    %c0_10 = arith.constant 0 : index
    %27 = vector.load %arg4[%c0_8, %c0_9, %c0_10] : memref<1x8x128xbf16, #tpu.memory_space<vmem>>, vector<1x8x128xbf16>
    tpu.vector_store %arg4[%c0_8, %c0_9, %c0_10], %26 {strides = array<i32>} : memref<1x8x128xbf16, #tpu.memory_space<vmem>>, vector<1x8x128xbf16>,
    return
  }
  func.func @transform_0(%arg0: i32) -> i32 {
    %c0_i32 = arith.constant 0 : i32
    %c0_i32_0 = arith.constant 0 : i32
    return %c0_i32 : i32
  }
  func.func @transform_1(%arg0: i32) -> i32 {
    %c0_i32 = arith.constant 0 : i32
    %c0_i32_0 = arith.constant 0 : i32
    return %c0_i32 : i32
  }
  func.func @transform_2(%arg0: i32) -> (i32, i32, i32) {
    %c0_i32 = arith.constant 0 : i32
    %c0_i32_0 = arith.constant 0 : i32
    %c0_i32_1 = arith.constant 0 : i32
    return %arg0, %c0_i32, %c0_i32_0 : i32, i32, i32
  }
  func.func @transform_3(%arg0: i32) -> (i32, i32, i32) {
    %c0_i32 = arith.constant 0 : i32
    %c0_i32_0 = arith.constant 0 : i32
    %c0_i32_1 = arith.constant 0 : i32
    return %arg0, %c0_i32, %c0_i32_0 : i32, i32, i32
  }
}

module attributes {stable_mosaic.version = 11 : i64} {
  func.func @_mm_kernel(%arg0: i32, %arg1: i32, %arg2: memref<16x256xbf16, #tpu.memory_space<vmem>>, %arg3: memref<256x128xbf16, #tpu.memory_space<vmem>>, %arg4: memref<1x128xf32, #tpu.memory_space<vmem>>, %arg5: memref<16x128xbf16, #tpu.memory_space<vmem>>) attributes {dimension_semantics = [#tpu.dimension_semantics<parallel>, #tpu.dimension_semantics<parallel>], iteration_bounds = array<i64: 2, 1>, scalar_prefetch = 0 : i64, scratch_operands = 0 : i64, tpu.core_type = #tpu.core_type<tc>, window_params = [{transform_indices = @transform_0, window_bounds = array<i64: 16, 256>}, {transform_indices = @transform_1, window_bounds = array<i64: 256, 128>}, {transform_indices = @transform_2, window_bounds = array<i64: 1, 128>}, {transform_indices = @transform_3, window_bounds = array<i64: 16, 128>}]} {
    %c0 = arith.constant 0 : index
    %c0_0 = arith.constant 0 : index
    %0 = vector.load %arg2[%c0, %c0_0] : memref<16x256xbf16, #tpu.memory_space<vmem>>, vector<16x256xbf16>
    %c0_1 = arith.constant 0 : index
    %c0_2 = arith.constant 0 : index
    %1 = vector.load %arg3[%c0_1, %c0_2] : memref<256x128xbf16, #tpu.memory_space<vmem>>, vector<256x128xbf16>
    %cst = arith.constant dense<0.000000e+00> : vector<16x128xf32>
    %2 = tpu.matmul %0, %1, %cst {dimension_numbers = #tpu.dot_dimension_numbers<[1], [0], [0], [1], [0, 0, 1, 1], [], []>} : vector<16x256xbf16>, vector<256x128xbf16>, vector<16x128xf32> -> vector<16x128xf32>
    %c0_3 = arith.constant 0 : index
    %c0_4 = arith.constant 0 : index
    %3 = vector.load %arg4[%c0_3, %c0_4] : memref<1x128xf32, #tpu.memory_space<vmem>>, vector<1x128xf32>
    %4 = vector.broadcast %3 : vector<1x128xf32> to vector<16x128xf32>
    %5 = arith.addf %2, %4 : vector<16x128xf32>
    %6 = arith.truncf %5 : vector<16x128xf32> to vector<16x128xbf16>
    %c0_5 = arith.constant 0 : index
    %c0_6 = arith.constant 0 : index
    %7 = vector.load %arg5[%c0_5, %c0_6] : memref<16x128xbf16, #tpu.memory_space<vmem>>, vector<16x128xbf16>
    tpu.vector_store %arg5[%c0_5, %c0_6], %6 {strides = array<i32>} : memref<16x128xbf16, #tpu.memory_space<vmem>>, vector<16x128xbf16>,
    return
  }
  func.func @transform_0(%arg0: i32, %arg1: i32) -> (i32, i32) {
    %c0_i32 = arith.constant 0 : i32
    %c0_i32_0 = arith.constant 0 : i32
    return %arg0, %c0_i32 : i32, i32
  }
  func.func @transform_1(%arg0: i32, %arg1: i32) -> (i32, i32) {
    %c0_i32 = arith.constant 0 : i32
    %c0_i32_0 = arith.constant 0 : i32
    return %c0_i32, %arg1 : i32, i32
  }
  func.func @transform_2(%arg0: i32, %arg1: i32) -> (i32, i32) {
    %c0_i32 = arith.constant 0 : i32
    %c0_i32_0 = arith.constant 0 : i32
    return %c0_i32, %arg1 : i32, i32
  }
  func.func @transform_3(%arg0: i32, %arg1: i32) -> (i32, i32) {
    %c0_i32 = arith.constant 0 : i32
    return %arg0, %arg1 : i32, i32
  }
}

module attributes {stable_mosaic.version = 11 : i64} {
  func.func @_mm_kernel(%arg0: i32, %arg1: i32, %arg2: memref<16x384xbf16, #tpu.memory_space<vmem>>, %arg3: memref<384x128xbf16, #tpu.memory_space<vmem>>, %arg4: memref<1x128xf32, #tpu.memory_space<vmem>>, %arg5: memref<16x128xbf16, #tpu.memory_space<vmem>>) attributes {dimension_semantics = [#tpu.dimension_semantics<parallel>, #tpu.dimension_semantics<parallel>], iteration_bounds = array<i64: 2, 1>, scalar_prefetch = 0 : i64, scratch_operands = 0 : i64, tpu.core_type = #tpu.core_type<tc>, window_params = [{transform_indices = @transform_0, window_bounds = array<i64: 16, 384>}, {transform_indices = @transform_1, window_bounds = array<i64: 384, 128>}, {transform_indices = @transform_2, window_bounds = array<i64: 1, 128>}, {transform_indices = @transform_3, window_bounds = array<i64: 16, 128>}]} {
    %c0 = arith.constant 0 : index
    %c0_0 = arith.constant 0 : index
    %0 = vector.load %arg2[%c0, %c0_0] : memref<16x384xbf16, #tpu.memory_space<vmem>>, vector<16x384xbf16>
    %c0_1 = arith.constant 0 : index
    %c0_2 = arith.constant 0 : index
    %1 = vector.load %arg3[%c0_1, %c0_2] : memref<384x128xbf16, #tpu.memory_space<vmem>>, vector<384x128xbf16>
    %cst = arith.constant dense<0.000000e+00> : vector<16x128xf32>
    %2 = tpu.matmul %0, %1, %cst {dimension_numbers = #tpu.dot_dimension_numbers<[1], [0], [0], [1], [0, 0, 1, 1], [], []>} : vector<16x384xbf16>, vector<384x128xbf16>, vector<16x128xf32> -> vector<16x128xf32>
    %c0_3 = arith.constant 0 : index
    %c0_4 = arith.constant 0 : index
    %3 = vector.load %arg4[%c0_3, %c0_4] : memref<1x128xf32, #tpu.memory_space<vmem>>, vector<1x128xf32>
    %4 = vector.broadcast %3 : vector<1x128xf32> to vector<16x128xf32>
    %5 = arith.addf %2, %4 : vector<16x128xf32>
    %6 = arith.truncf %5 : vector<16x128xf32> to vector<16x128xbf16>
    %c0_5 = arith.constant 0 : index
    %c0_6 = arith.constant 0 : index
    %7 = vector.load %arg5[%c0_5, %c0_6] : memref<16x128xbf16, #tpu.memory_space<vmem>>, vector<16x128xbf16>
    tpu.vector_store %arg5[%c0_5, %c0_6], %6 {strides = array<i32>} : memref<16x128xbf16, #tpu.memory_space<vmem>>, vector<16x128xbf16>,
    return
  }
  func.func @transform_0(%arg0: i32, %arg1: i32) -> (i32, i32) {
    %c0_i32 = arith.constant 0 : i32
    %c0_i32_0 = arith.constant 0 : i32
    return %arg0, %c0_i32 : i32, i32
  }
  func.func @transform_1(%arg0: i32, %arg1: i32) -> (i32, i32) {
    %c0_i32 = arith.constant 0 : i32
    %c0_i32_0 = arith.constant 0 : i32
    return %c0_i32, %arg1 : i32, i32
  }
  func.func @transform_2(%arg0: i32, %arg1: i32) -> (i32, i32) {
    %c0_i32 = arith.constant 0 : i32
    %c0_i32_0 = arith.constant 0 : i32
    return %c0_i32, %arg1 : i32, i32
  }
  func.func @transform_3(%arg0: i32, %arg1: i32) -> (i32, i32) {
    %c0_i32 = arith.constant 0 : i32
    return %arg0, %arg1 : i32, i32
  }
}

module attributes {stable_mosaic.version = 11 : i64} {
  func.func @_instance_norm_kernel(%arg0: i32, %arg1: memref<1xf32, #tpu.memory_space<smem>>, %arg2: memref<1xf32, #tpu.memory_space<smem>>, %arg3: memref<1x16x128xbf16, #tpu.memory_space<vmem>>, %arg4: memref<1x16x128xbf16, #tpu.memory_space<vmem>>) attributes {dimension_semantics = [#tpu.dimension_semantics<parallel>], iteration_bounds = array<i64: 2>, scalar_prefetch = 0 : i64, scratch_operands = 0 : i64, tpu.core_type = #tpu.core_type<tc>, window_params = [{transform_indices = @transform_0, window_bounds = array<i64: 1>}, {transform_indices = @transform_1, window_bounds = array<i64: 1>}, {transform_indices = @transform_2, window_bounds = array<i64: 1, 16, 128>}, {transform_indices = @transform_3, window_bounds = array<i64: 1, 16, 128>}]} {
    %c0 = arith.constant 0 : index
    %c0_0 = arith.constant 0 : index
    %c0_1 = arith.constant 0 : index
    %0 = vector.load %arg3[%c0, %c0_0, %c0_1] : memref<1x16x128xbf16, #tpu.memory_space<vmem>>, vector<1x16x128xbf16>
    %1 = arith.extf %0 : vector<1x16x128xbf16> to vector<1x16x128xf32>
    %2 = vector.shape_cast %1 : vector<1x16x128xf32> to vector<1x1x16x128xf32>
    %cst = arith.constant dense<0.000000e+00> : vector<1xf32>
    %3 = vector.multi_reduction <add>, %2, %cst [1, 2, 3] : vector<1x1x16x128xf32> to vector<1xf32>
    %4 = vector.shape_cast %3 : vector<1xf32> to vector<1x1x1x1xf32>
    %5 = vector.extract %4[0, 0, 0, 0] : f32 from vector<1x1x1x1xf32>
    %6 = arith.mulf %1, %1 : vector<1x16x128xf32>
    %7 = vector.shape_cast %6 : vector<1x16x128xf32> to vector<1x1x16x128xf32>
    %cst_2 = arith.constant dense<0.000000e+00> : vector<1xf32>
    %8 = vector.multi_reduction <add>, %7, %cst_2 [1, 2, 3] : vector<1x1x16x128xf32> to vector<1xf32>
    %9 = vector.shape_cast %8 : vector<1xf32> to vector<1x1x1x1xf32>
    %10 = vector.extract %9[0, 0, 0, 0] : f32 from vector<1x1x1x1xf32>
    %cst_3 = arith.constant 4.8828125E-4 : f32
    %11 = arith.mulf %5, %cst_3 : f32
    %cst_4 = arith.constant 4.8828125E-4 : f32
    %12 = arith.mulf %10, %cst_4 : f32
    %13 = arith.mulf %11, %11 : f32
    %14 = arith.subf %12, %13 : f32
    %cst_5 = arith.constant 1.000000e-03 : f32
    %15 = arith.addf %14, %cst_5 : f32
    %16 = math.rsqrt %15 : f32
    %17 = vector.broadcast %11 : f32 to vector<1x16x128xf32>
    %18 = arith.subf %1, %17 : vector<1x16x128xf32>
    %c0_6 = arith.constant 0 : index
    %19 = memref.load %arg1[%c0_6] : memref<1xf32, #tpu.memory_space<smem>>
    %20 = arith.mulf %16, %19 : f32
    %21 = vector.broadcast %20 : f32 to vector<1x16x128xf32>
    %22 = arith.mulf %18, %21 : vector<1x16x128xf32>
    %c0_7 = arith.constant 0 : index
    %23 = memref.load %arg2[%c0_7] : memref<1xf32, #tpu.memory_space<smem>>
    %24 = vector.broadcast %23 : f32 to vector<1x16x128xf32>
    %25 = arith.addf %22, %24 : vector<1x16x128xf32>
    %26 = arith.truncf %25 : vector<1x16x128xf32> to vector<1x16x128xbf16>
    %c0_8 = arith.constant 0 : index
    %c0_9 = arith.constant 0 : index
    %c0_10 = arith.constant 0 : index
    %27 = vector.load %arg4[%c0_8, %c0_9, %c0_10] : memref<1x16x128xbf16, #tpu.memory_space<vmem>>, vector<1x16x128xbf16>
    tpu.vector_store %arg4[%c0_8, %c0_9, %c0_10], %26 {strides = array<i32>} : memref<1x16x128xbf16, #tpu.memory_space<vmem>>, vector<1x16x128xbf16>,
    return
  }
  func.func @transform_0(%arg0: i32) -> i32 {
    %c0_i32 = arith.constant 0 : i32
    %c0_i32_0 = arith.constant 0 : i32
    return %c0_i32 : i32
  }
  func.func @transform_1(%arg0: i32) -> i32 {
    %c0_i32 = arith.constant 0 : i32
    %c0_i32_0 = arith.constant 0 : i32
    return %c0_i32 : i32
  }
  func.func @transform_2(%arg0: i32) -> (i32, i32, i32) {
    %c0_i32 = arith.constant 0 : i32
    %c0_i32_0 = arith.constant 0 : i32
    %c0_i32_1 = arith.constant 0 : i32
    return %arg0, %c0_i32, %c0_i32_0 : i32, i32, i32
  }
  func.func @transform_3(%arg0: i32) -> (i32, i32, i32) {
    %c0_i32 = arith.constant 0 : i32
    %c0_i32_0 = arith.constant 0 : i32
    %c0_i32_1 = arith.constant 0 : i32
    return %arg0, %c0_i32, %c0_i32_0 : i32, i32, i32
  }
}

module attributes {stable_mosaic.version = 11 : i64} {
  func.func @_mm_kernel(%arg0: i32, %arg1: i32, %arg2: memref<64x512xbf16, #tpu.memory_space<vmem>>, %arg3: memref<512x128xbf16, #tpu.memory_space<vmem>>, %arg4: memref<1x128xf32, #tpu.memory_space<vmem>>, %arg5: memref<64x128xbf16, #tpu.memory_space<vmem>>) attributes {dimension_semantics = [#tpu.dimension_semantics<parallel>, #tpu.dimension_semantics<parallel>], iteration_bounds = array<i64: 2, 1>, scalar_prefetch = 0 : i64, scratch_operands = 0 : i64, tpu.core_type = #tpu.core_type<tc>, window_params = [{transform_indices = @transform_0, window_bounds = array<i64: 64, 512>}, {transform_indices = @transform_1, window_bounds = array<i64: 512, 128>}, {transform_indices = @transform_2, window_bounds = array<i64: 1, 128>}, {transform_indices = @transform_3, window_bounds = array<i64: 64, 128>}]} {
    %c0 = arith.constant 0 : index
    %c0_0 = arith.constant 0 : index
    %0 = vector.load %arg2[%c0, %c0_0] : memref<64x512xbf16, #tpu.memory_space<vmem>>, vector<64x512xbf16>
    %c0_1 = arith.constant 0 : index
    %c0_2 = arith.constant 0 : index
    %1 = vector.load %arg3[%c0_1, %c0_2] : memref<512x128xbf16, #tpu.memory_space<vmem>>, vector<512x128xbf16>
    %cst = arith.constant dense<0.000000e+00> : vector<64x128xf32>
    %2 = tpu.matmul %0, %1, %cst {dimension_numbers = #tpu.dot_dimension_numbers<[1], [0], [0], [1], [0, 0, 1, 1], [], []>} : vector<64x512xbf16>, vector<512x128xbf16>, vector<64x128xf32> -> vector<64x128xf32>
    %c0_3 = arith.constant 0 : index
    %c0_4 = arith.constant 0 : index
    %3 = vector.load %arg4[%c0_3, %c0_4] : memref<1x128xf32, #tpu.memory_space<vmem>>, vector<1x128xf32>
    %4 = vector.broadcast %3 : vector<1x128xf32> to vector<64x128xf32>
    %5 = arith.addf %2, %4 : vector<64x128xf32>
    %6 = arith.truncf %5 : vector<64x128xf32> to vector<64x128xbf16>
    %c0_5 = arith.constant 0 : index
    %c0_6 = arith.constant 0 : index
    %7 = vector.load %arg5[%c0_5, %c0_6] : memref<64x128xbf16, #tpu.memory_space<vmem>>, vector<64x128xbf16>
    tpu.vector_store %arg5[%c0_5, %c0_6], %6 {strides = array<i32>} : memref<64x128xbf16, #tpu.memory_space<vmem>>, vector<64x128xbf16>,
    return
  }
  func.func @transform_0(%arg0: i32, %arg1: i32) -> (i32, i32) {
    %c0_i32 = arith.constant 0 : i32
    %c0_i32_0 = arith.constant 0 : i32
    return %arg0, %c0_i32 : i32, i32
  }
  func.func @transform_1(%arg0: i32, %arg1: i32) -> (i32, i32) {
    %c0_i32 = arith.constant 0 : i32
    %c0_i32_0 = arith.constant 0 : i32
    return %c0_i32, %arg1 : i32, i32
  }
  func.func @transform_2(%arg0: i32, %arg1: i32) -> (i32, i32) {
    %c0_i32 = arith.constant 0 : i32
    %c0_i32_0 = arith.constant 0 : i32
    return %c0_i32, %arg1 : i32, i32
  }
  func.func @transform_3(%arg0: i32, %arg1: i32) -> (i32, i32) {
    %c0_i32 = arith.constant 0 : i32
    return %arg0, %arg1 : i32, i32
  }
}

module attributes {stable_mosaic.version = 11 : i64} {
  func.func @_instance_norm_kernel(%arg0: i32, %arg1: memref<1xf32, #tpu.memory_space<smem>>, %arg2: memref<1xf32, #tpu.memory_space<smem>>, %arg3: memref<1x32x128xbf16, #tpu.memory_space<vmem>>, %arg4: memref<1x32x128xbf16, #tpu.memory_space<vmem>>) attributes {dimension_semantics = [#tpu.dimension_semantics<parallel>], iteration_bounds = array<i64: 2>, scalar_prefetch = 0 : i64, scratch_operands = 0 : i64, tpu.core_type = #tpu.core_type<tc>, window_params = [{transform_indices = @transform_0, window_bounds = array<i64: 1>}, {transform_indices = @transform_1, window_bounds = array<i64: 1>}, {transform_indices = @transform_2, window_bounds = array<i64: 1, 32, 128>}, {transform_indices = @transform_3, window_bounds = array<i64: 1, 32, 128>}]} {
    %c0 = arith.constant 0 : index
    %c0_0 = arith.constant 0 : index
    %c0_1 = arith.constant 0 : index
    %0 = vector.load %arg3[%c0, %c0_0, %c0_1] : memref<1x32x128xbf16, #tpu.memory_space<vmem>>, vector<1x32x128xbf16>
    %1 = arith.extf %0 : vector<1x32x128xbf16> to vector<1x32x128xf32>
    %2 = vector.shape_cast %1 : vector<1x32x128xf32> to vector<1x1x32x128xf32>
    %cst = arith.constant dense<0.000000e+00> : vector<1xf32>
    %3 = vector.multi_reduction <add>, %2, %cst [1, 2, 3] : vector<1x1x32x128xf32> to vector<1xf32>
    %4 = vector.shape_cast %3 : vector<1xf32> to vector<1x1x1x1xf32>
    %5 = vector.extract %4[0, 0, 0, 0] : f32 from vector<1x1x1x1xf32>
    %6 = arith.mulf %1, %1 : vector<1x32x128xf32>
    %7 = vector.shape_cast %6 : vector<1x32x128xf32> to vector<1x1x32x128xf32>
    %cst_2 = arith.constant dense<0.000000e+00> : vector<1xf32>
    %8 = vector.multi_reduction <add>, %7, %cst_2 [1, 2, 3] : vector<1x1x32x128xf32> to vector<1xf32>
    %9 = vector.shape_cast %8 : vector<1xf32> to vector<1x1x1x1xf32>
    %10 = vector.extract %9[0, 0, 0, 0] : f32 from vector<1x1x1x1xf32>
    %cst_3 = arith.constant 2.44140625E-4 : f32
    %11 = arith.mulf %5, %cst_3 : f32
    %cst_4 = arith.constant 2.44140625E-4 : f32
    %12 = arith.mulf %10, %cst_4 : f32
    %13 = arith.mulf %11, %11 : f32
    %14 = arith.subf %12, %13 : f32
    %cst_5 = arith.constant 1.000000e-03 : f32
    %15 = arith.addf %14, %cst_5 : f32
    %16 = math.rsqrt %15 : f32
    %17 = vector.broadcast %11 : f32 to vector<1x32x128xf32>
    %18 = arith.subf %1, %17 : vector<1x32x128xf32>
    %c0_6 = arith.constant 0 : index
    %19 = memref.load %arg1[%c0_6] : memref<1xf32, #tpu.memory_space<smem>>
    %20 = arith.mulf %16, %19 : f32
    %21 = vector.broadcast %20 : f32 to vector<1x32x128xf32>
    %22 = arith.mulf %18, %21 : vector<1x32x128xf32>
    %c0_7 = arith.constant 0 : index
    %23 = memref.load %arg2[%c0_7] : memref<1xf32, #tpu.memory_space<smem>>
    %24 = vector.broadcast %23 : f32 to vector<1x32x128xf32>
    %25 = arith.addf %22, %24 : vector<1x32x128xf32>
    %26 = arith.truncf %25 : vector<1x32x128xf32> to vector<1x32x128xbf16>
    %c0_8 = arith.constant 0 : index
    %c0_9 = arith.constant 0 : index
    %c0_10 = arith.constant 0 : index
    %27 = vector.load %arg4[%c0_8, %c0_9, %c0_10] : memref<1x32x128xbf16, #tpu.memory_space<vmem>>, vector<1x32x128xbf16>
    tpu.vector_store %arg4[%c0_8, %c0_9, %c0_10], %26 {strides = array<i32>} : memref<1x32x128xbf16, #tpu.memory_space<vmem>>, vector<1x32x128xbf16>,
    return
  }
  func.func @transform_0(%arg0: i32) -> i32 {
    %c0_i32 = arith.constant 0 : i32
    %c0_i32_0 = arith.constant 0 : i32
    return %c0_i32 : i32
  }
  func.func @transform_1(%arg0: i32) -> i32 {
    %c0_i32 = arith.constant 0 : i32
    %c0_i32_0 = arith.constant 0 : i32
    return %c0_i32 : i32
  }
  func.func @transform_2(%arg0: i32) -> (i32, i32, i32) {
    %c0_i32 = arith.constant 0 : i32
    %c0_i32_0 = arith.constant 0 : i32
    %c0_i32_1 = arith.constant 0 : i32
    return %arg0, %c0_i32, %c0_i32_0 : i32, i32, i32
  }
  func.func @transform_3(%arg0: i32) -> (i32, i32, i32) {
    %c0_i32 = arith.constant 0 : i32
    %c0_i32_0 = arith.constant 0 : i32
    %c0_i32_1 = arith.constant 0 : i32
    return %arg0, %c0_i32, %c0_i32_0 : i32, i32, i32
  }
}

module attributes {stable_mosaic.version = 11 : i64} {
  func.func @_mm_kernel(%arg0: i32, %arg1: i32, %arg2: memref<256x256xbf16, #tpu.memory_space<vmem>>, %arg3: memref<256x128xbf16, #tpu.memory_space<vmem>>, %arg4: memref<1x128xf32, #tpu.memory_space<vmem>>, %arg5: memref<256x128xf32, #tpu.memory_space<vmem>>) attributes {dimension_semantics = [#tpu.dimension_semantics<parallel>, #tpu.dimension_semantics<parallel>], iteration_bounds = array<i64: 2, 1>, scalar_prefetch = 0 : i64, scratch_operands = 0 : i64, tpu.core_type = #tpu.core_type<tc>, window_params = [{transform_indices = @transform_0, window_bounds = array<i64: 256, 256>}, {transform_indices = @transform_1, window_bounds = array<i64: 256, 128>}, {transform_indices = @transform_2, window_bounds = array<i64: 1, 128>}, {transform_indices = @transform_3, window_bounds = array<i64: 256, 128>}]} {
    %c0 = arith.constant 0 : index
    %c0_0 = arith.constant 0 : index
    %0 = vector.load %arg2[%c0, %c0_0] : memref<256x256xbf16, #tpu.memory_space<vmem>>, vector<256x256xbf16>
    %c0_1 = arith.constant 0 : index
    %c0_2 = arith.constant 0 : index
    %1 = vector.load %arg3[%c0_1, %c0_2] : memref<256x128xbf16, #tpu.memory_space<vmem>>, vector<256x128xbf16>
    %cst = arith.constant dense<0.000000e+00> : vector<256x128xf32>
    %2 = tpu.matmul %0, %1, %cst {dimension_numbers = #tpu.dot_dimension_numbers<[1], [0], [0], [1], [0, 0, 1, 1], [], []>} : vector<256x256xbf16>, vector<256x128xbf16>, vector<256x128xf32> -> vector<256x128xf32>
    %c0_3 = arith.constant 0 : index
    %c0_4 = arith.constant 0 : index
    %3 = vector.load %arg4[%c0_3, %c0_4] : memref<1x128xf32, #tpu.memory_space<vmem>>, vector<1x128xf32>
    %4 = vector.broadcast %3 : vector<1x128xf32> to vector<256x128xf32>
    %5 = arith.addf %2, %4 : vector<256x128xf32>
    %6 = math.tanh %5 : vector<256x128xf32>
    %c0_5 = arith.constant 0 : index
    %c0_6 = arith.constant 0 : index
    %7 = vector.load %arg5[%c0_5, %c0_6] : memref<256x128xf32, #tpu.memory_space<vmem>>, vector<256x128xf32>
    tpu.vector_store %arg5[%c0_5, %c0_6], %6 {strides = array<i32>} : memref<256x128xf32, #tpu.memory_space<vmem>>, vector<256x128xf32>,
    return
  }
  func.func @transform_0(%arg0: i32, %arg1: i32) -> (i32, i32) {
    %c0_i32 = arith.constant 0 : i32
    %c0_i32_0 = arith.constant 0 : i32
    return %arg0, %c0_i32 : i32, i32
  }
  func.func @transform_1(%arg0: i32, %arg1: i32) -> (i32, i32) {
    %c0_i32 = arith.constant 0 : i32
    %c0_i32_0 = arith.constant 0 : i32
    return %c0_i32, %arg1 : i32, i32
  }
  func.func @transform_2(%arg0: i32, %arg1: i32) -> (i32, i32) {
    %c0_i32 = arith.constant 0 : i32
    %c0_i32_0 = arith.constant 0 : i32
    return %c0_i32, %arg1 : i32, i32
  }
  func.func @transform_3(%arg0: i32, %arg1: i32) -> (i32, i32) {
    %c0_i32 = arith.constant 0 : i32
    return %arg0, %arg1 : i32, i32
  }
}

</mosaic_0001>

<bundles_post_ra>
// kernel: generator_forward.9
= control target key start
LH: loop header
LB: loop body
LE: loop exit
PB: predicated region body
PF: predicated region fallthrough
CT: control target
= control target key end

     0   :  { %s1225_s12 = smov 0   ;;  %s1227_s13 = smov 0   ;;  %s1362_s0 = inlined_call_operand.vmem [shape: bf16[512,128], index: 0, kind: input, shape index: {}]   ;;  %s1363_s1 = inlined_call_operand.vmem [shape: bf16[128,128], index: 1, kind: input, shape index: {}]   ;;  %s1364_s2 = inlined_call_operand.vmem [shape: f32[1,128], index: 2, kind: input, shape index: {}]   ;;  %s1365_s3 = inlined_call_operand.vmem [shape: bf16[512,128], index: 3, kind: output, shape index: {}]  }
   0x1   :  { %s1229_s14 = smov 0  }
   0x2 LB: > { %s25_s15 = sadd.s32 1, %s1199_s13  ;;  %p854_p0 = scmp.ge.s32.totalorder %s1203_s14, 1  ;;  %s1203_s14 = sphi %s1229_s14, %s13_s14   ;;  %s1199_s13 = sphi %s1227_s13, %s1367_s13   ;;  %s1195_s12 = sphi %s1225_s12, %s1366_s12  }
   0x3   : > { %p27_p1 = scmp.ge.s32.totalorder %s25_s15, 2  ;;  %p169_p2 = scmp.lt.s32.totalorder %s1203_s14, 3 }
   0x5   : > { %s1369_s15 = smov (%p27_p1, %s25_s15), 0  ;;  %p170_p3 = pnand %p854_p0, %p169_p2 }
   0x6   : > { %s855_s18 = sshll.u32 (!%p170_p3), %s1195_s12, 5 }
   0x7   : > { %173 = sbr.rel (%p170_p3) target bundleno = 273 (0x111), region = 32  ;;  %p204_p4 = scmp.lt.s32.totalorder (!%p170_p3), %s855_s18, 63 }
   0xc   : > { %v1157_v0 = vld [vmem:[%s1363_s1 + $0x38] sm:$0xff]   ;;  %v1158_v1 = vld [vmem:[%s1363_s1 + $0x30] sm:$0xff]   ;;  %s1371_s18 = smov (!%p204_p4, %s855_s18), 63  ;;  %v1159_v2 = vld [vmem:[%s1363_s1 + $0x28] sm:$0xff]  }
   0xd   : > { %1069 = vmatprep.subr.bf16.mxu0 %v1157_v0  ;;  %1117 = vmatprep.subr.bf16.mxu1 %v1157_v0  ;;  %s856_s23 = sshll.u32 %s1371_s18, 2  ;;  %v1160_v3 = vld [vmem:[%s1363_s1 + $0x20] sm:$0xff]   ;;  %v1161_v6 = vld [vmem:[%s1363_s1 + $0x18] sm:$0xff]   ;;  %v1162_v7 = vld [vmem:[%s1363_s1 + $0x10] sm:$0xff]  }
   0xe   : > { %1070 = vmatpush3.bf16.msra.mxu0 %v1157_v0  ;;  %1125 = vmatpush3.bf16.msra.mxu1 %v1157_v0  ;;  %s1260_s26 = scalar_lea.vmem %s1362_s0, %s856_s23  ;;  %v1163_v8 = vld [vmem:[%s1363_s1 + $0x8] sm:$0xff]   ;;  %v1164_v9 = vld [vmem:[%s1363_s1] sm:$0xff]   ;;  %s1309_s17 = scalar_lea.vmem %s1365_s3, %s856_s23 }
   0xf   : > { %1071 = vmatprep.subr.bf16.mxu0 %v1158_v1  ;;  %1118 = vmatprep.subr.bf16.mxu1 %v1158_v1  ;;  %v1165_v4 = vld [vmem:[%s1260_s26] sm:$0xff]   ;;  %v1167_v10 = vld [vmem:[%s1260_s26 + $0x8] sm:$0xff]   ;;  %v1169_v12 = vld [vmem:[%s1260_s26 + $0x10] sm:$0xff]  }
  0x10   : > { %v1166_v5 = vld [vmem:[%s1260_s26 + $0x40] sm:$0xff]   ;;  %1085 = vmatprep.mubr.bf16.mxu0 %v1165_v4  ;;  %v1168_v11 = vld [vmem:[%s1260_s26 + $0x48] sm:$0xff]   ;;  %v1170_v13 = vld [vmem:[%s1260_s26 + $0x50] sm:$0xff]  }
  0x11   : > { %1101 = vmatprep.mubr.bf16.mxu1 %v1166_v5  ;;  %v1171_v14 = vld [vmem:[%s1260_s26 + $0x18] sm:$0xff]   ;;  %v1173_v16 = vld [vmem:[%s1260_s26 + $0x20] sm:$0xff]   ;;  %v1175_v18 = vld [vmem:[%s1260_s26 + $0x28] sm:$0xff]  }
  0x12   : > { %1072 = vmatpush3.bf16.msra.mxu0 %v1158_v1  ;;  %1126 = vmatpush3.bf16.msra.mxu1 %v1158_v1  ;;  %v1172_v15 = vld [vmem:[%s1260_s26 + $0x58] sm:$0xff]   ;;  %v1174_v17 = vld [vmem:[%s1260_s26 + $0x60] sm:$0xff]   ;;  %v1176_v19 = vld [vmem:[%s1260_s26 + $0x68] sm:$0xff]  }
  0x13   : > { %1073 = vmatprep.subr.bf16.mxu0 %v1159_v2  ;;  %1119 = vmatprep.subr.bf16.mxu1 %v1159_v2  ;;  %v1177_v20 = vld [vmem:[%s1260_s26 + $0x30] sm:$0xff]   ;;  %v1179_v22 = vld [vmem:[%s1260_s26 + $0x38] sm:$0xff]   ;;  %v1296_v26 = vld [vmem:[%s1364_s2] ss:$0 sm:$0xff] }
  0x14   : > { %v1178_v21 = vld [vmem:[%s1260_s26 + $0x70] sm:$0xff]   ;;  %v1180_v23 = vld [vmem:[%s1260_s26 + $0x78] sm:$0xff]  }
  0x16   : > { %1074 = vmatpush3.bf16.msra.mxu0 %v1159_v2  ;;  %1127 = vmatpush3.bf16.msra.mxu1 %v1159_v2 }
  0x17   : > { %1075 = vmatprep.subr.bf16.mxu0 %v1160_v3  ;;  %1120 = vmatprep.subr.bf16.mxu1 %v1160_v3 }
  0x1a   : > { %1076 = vmatpush3.bf16.msra.mxu0 %v1160_v3  ;;  %1128 = vmatpush3.bf16.msra.mxu1 %v1160_v3 }
  0x1b   : > { %1077 = vmatprep.subr.bf16.mxu0 %v1161_v6  ;;  %1121 = vmatprep.subr.bf16.mxu1 %v1161_v6 }
  0x1e   : > { %1078 = vmatpush3.bf16.msra.mxu0 %v1161_v6  ;;  %1129 = vmatpush3.bf16.msra.mxu1 %v1161_v6 }
  0x1f   : > { %1079 = vmatprep.subr.bf16.mxu0 %v1162_v7  ;;  %1122 = vmatprep.subr.bf16.mxu1 %v1162_v7 }
  0x22   : > { %1080 = vmatpush3.bf16.msra.mxu0 %v1162_v7  ;;  %1130 = vmatpush3.bf16.msra.mxu1 %v1162_v7 }
  0x23   : > { %1081 = vmatprep.subr.bf16.mxu0 %v1163_v8  ;;  %1123 = vmatprep.subr.bf16.mxu1 %v1163_v8 }
  0x26   : > { %1082 = vmatpush3.bf16.msra.mxu0 %v1163_v8  ;;  %1131 = vmatpush3.bf16.msra.mxu1 %v1163_v8 }
  0x27   : > { %1083 = vmatprep.subr.bf16.mxu0 %v1164_v9  ;;  %1124 = vmatprep.subr.bf16.mxu1 %v1164_v9 }
  0x2a   : > { %1084 = vmatpush3.bf16.msra.mxu0 %v1164_v9  ;;  %1132 = vmatpush3.bf16.msra.mxu1 %v1164_v9 }
  0x2d   : > { %1086 = vmatmul.mubr.bf16.vlgmr.msra.gmra.mxu0 %v1167_v10  ;;  %1102 = vmatmul.mubr.bf16.vlgmr.msra.gmra.mxu1 %v1168_v11 }
  0x2e   : > { %1089 = vmatprep.mubr.bf16.mxu0 %v1169_v12  ;;  %1105 = vmatprep.mubr.bf16.mxu1 %v1170_v13 }
  0x35   : > { %1090 = vmatmul.mubr.bf16.gmra.mxu0 %v1171_v14  ;;  %1106 = vmatmul.mubr.bf16.gmra.mxu1 %v1172_v15 }
  0x36   : > { %1093 = vmatprep.mubr.bf16.mxu0 %v1173_v16  ;;  %1109 = vmatprep.mubr.bf16.mxu1 %v1174_v17 }
  0x3d   : > { %1094 = vmatmul.mubr.bf16.gmra.mxu0 %v1175_v18  ;;  %1110 = vmatmul.mubr.bf16.gmra.mxu1 %v1176_v19 }
  0x3e   : > { %1097 = vmatprep.mubr.bf16.mxu0 %v1177_v20  ;;  %1113 = vmatprep.mubr.bf16.mxu1 %v1178_v21 }
  0x45   : > { %1098 = vmatmul.mubr.bf16.gmra.mxu0 %v1179_v22  ;;  %1114 = vmatmul.mubr.bf16.gmra.mxu1 %v1180_v23 }
  0xed   : > { %v1087_v24 = vpop.f32.mrf.mxu0  ;;  %v1103_v25 = vpop.f32.mrf.mxu1 }
  0xee   : > { %v468_v31 = vadd.f32 %v1087_v24, %v1296_v26  ;;  %v532_v32 = vadd.f32 %v1103_v25, %v1296_v26 }
  0xef   : > { %v459_v27 = vpop.f32.mrf.mxu0  ;;  %v523_v28 = vpop.f32.mrf.mxu1 }
  0xf0   : > { %v460_v35 = vadd.f32 %v1296_v26, %v459_v27  ;;  %v524_v36 = vadd.f32 %v1296_v26, %v523_v28 }
  0xf1   : > { %v1088_v29 = vpop.f32.mrf.mxu0  ;;  %v1104_v30 = vpop.f32.mrf.mxu1 }
  0xf2   : > { %v471_v33 = vadd.f32 %v1088_v29, %v1296_v26  ;;  %v535_v34 = vadd.f32 %v1104_v30, %v1296_v26 }
  0xf3   : > { %v462_v37 = vpop.f32.mrf.mxu0  ;;  %v526_v38 = vpop.f32.mrf.mxu1 }
  0xf4   : > { %v958_v39 = vpack.c.bf16 %v471_v33, %v468_v31  ;;  %v998_v40 = vpack.c.bf16 %v535_v34, %v532_v32  ;;  %v463_v41 = vadd.f32 %v1296_v26, %v462_v37  ;;  %v527_v42 = vadd.f32 %v1296_v26, %v526_v38 }
  0xf5   : > { %v1091_v43 = vpop.f32.mrf.mxu0  ;;  %v1107_v44 = vpop.f32.mrf.mxu1 }
  0xf6   : > { %1030 = vst [vmem:[%s1309_s17 + $0x8] sm:$0xff] %v958_v39   ;;  %1038 = vst [vmem:[%s1309_s17 + $0x48] sm:$0xff] %v998_v40   ;;  %v953_v45 = vpack.c.bf16 %v463_v41, %v460_v35  ;;  %v993_v46 = vpack.c.bf16 %v527_v42, %v524_v36  ;;  %v484_v51 = vadd.f32 %v1091_v43, %v1296_v26 }
  0xf7   : > { %v475_v47 = vpop.f32.mrf.mxu0  ;;  %v539_v48 = vpop.f32.mrf.mxu1  ;;  %v548_v52 = vadd.f32 %v1107_v44, %v1296_v26 }
  0xf8   : > { %954 = vst [vmem:[%s1309_s17] sm:$0xff] %v953_v45   ;;  %1037 = vst [vmem:[%s1309_s17 + $0x40] sm:$0xff] %v993_v46   ;;  %v476_v55 = vadd.f32 %v1296_v26, %v475_v47  ;;  %v540_v56 = vadd.f32 %v1296_v26, %v539_v48 }
  0xf9   : > { %v1092_v49 = vpop.f32.mrf.mxu0  ;;  %v1108_v50 = vpop.f32.mrf.mxu1 }
  0xfa   : > { %v487_v53 = vadd.f32 %v1092_v49, %v1296_v26  ;;  %v551_v54 = vadd.f32 %v1108_v50, %v1296_v26 }
  0xfb   : > { %v478_v57 = vpop.f32.mrf.mxu0  ;;  %v542_v58 = vpop.f32.mrf.mxu1 }
  0xfc   : > { %v968_v59 = vpack.c.bf16 %v487_v53, %v484_v51  ;;  %v1008_v60 = vpack.c.bf16 %v551_v54, %v548_v52  ;;  %v479_v61 = vadd.f32 %v1296_v26, %v478_v57  ;;  %v543_v62 = vadd.f32 %v1296_v26, %v542_v58 }
  0xfd   : > { %v1095_v63 = vpop.f32.mrf.mxu0  ;;  %v1111_v0 = vpop.f32.mrf.mxu1 }
  0xfe   : > { %1032 = vst [vmem:[%s1309_s17 + $0x18] sm:$0xff] %v968_v59   ;;  %1040 = vst [vmem:[%s1309_s17 + $0x58] sm:$0xff] %v1008_v60   ;;  %v963_v1 = vpack.c.bf16 %v479_v61, %v476_v55  ;;  %v1003_v2 = vpack.c.bf16 %v543_v62, %v540_v56  ;;  %v500_v7 = vadd.f32 %v1095_v63, %v1296_v26 }
  0xff   : > { %v491_v3 = vpop.f32.mrf.mxu0  ;;  %v555_v4 = vpop.f32.mrf.mxu1  ;;  %v564_v8 = vadd.f32 %v1111_v0, %v1296_v26 }
 0x100   : > { %1031 = vst [vmem:[%s1309_s17 + $0x10] sm:$0xff] %v963_v1   ;;  %1039 = vst [vmem:[%s1309_s17 + $0x50] sm:$0xff] %v1003_v2   ;;  %v492_v11 = vadd.f32 %v1296_v26, %v491_v3  ;;  %v556_v12 = vadd.f32 %v1296_v26, %v555_v4 }
 0x101   : > { %v1096_v5 = vpop.f32.mrf.mxu0  ;;  %v1112_v6 = vpop.f32.mrf.mxu1 }
 0x102   : > { %v503_v9 = vadd.f32 %v1096_v5, %v1296_v26  ;;  %v567_v10 = vadd.f32 %v1112_v6, %v1296_v26 }
 0x103   : > { %v494_v13 = vpop.f32.mrf.mxu0  ;;  %v558_v14 = vpop.f32.mrf.mxu1 }
 0x104   : > { %v978_v15 = vpack.c.bf16 %v503_v9, %v500_v7  ;;  %v1018_v16 = vpack.c.bf16 %v567_v10, %v564_v8  ;;  %v495_v17 = vadd.f32 %v1296_v26, %v494_v13  ;;  %v559_v18 = vadd.f32 %v1296_v26, %v558_v14 }
 0x105   : > { %v1099_v19 = vpop.f32.mrf.mxu0  ;;  %v1115_v20 = vpop.f32.mrf.mxu1 }
 0x106   : > { %1034 = vst [vmem:[%s1309_s17 + $0x28] sm:$0xff] %v978_v15   ;;  %1042 = vst [vmem:[%s1309_s17 + $0x68] sm:$0xff] %v1018_v16   ;;  %v973_v21 = vpack.c.bf16 %v495_v17, %v492_v11  ;;  %v1013_v22 = vpack.c.bf16 %v559_v18, %v556_v12  ;;  %v516_v28 = vadd.f32 %v1099_v19, %v1296_v26 }
 0x107   : > { %v507_v23 = vpop.f32.mrf.mxu0  ;;  %v571_v24 = vpop.f32.mrf.mxu1  ;;  %v580_v29 = vadd.f32 %v1115_v20, %v1296_v26 }
 0x108   : > { %1033 = vst [vmem:[%s1309_s17 + $0x20] sm:$0xff] %v973_v21   ;;  %1041 = vst [vmem:[%s1309_s17 + $0x60] sm:$0xff] %v1013_v22   ;;  %v508_v32 = vadd.f32 %v1296_v26, %v507_v23  ;;  %v572_v33 = vadd.f32 %v1296_v26, %v571_v24 }
 0x109   : > { %v1100_v25 = vpop.f32.mrf.mxu0  ;;  %v1116_v27 = vpop.f32.mrf.mxu1 }
 0x10a   : > { %v519_v30 = vadd.f32 %v1100_v25, %v1296_v26  ;;  %v583_v31 = vadd.f32 %v1116_v27, %v1296_v26 }
 0x10b   : > { %v510_v34 = vpop.f32.mrf.mxu0  ;;  %v574_v35 = vpop.f32.mrf.mxu1 }
 0x10c   : > { %v988_v36 = vpack.c.bf16 %v519_v30, %v516_v28  ;;  %v1028_v37 = vpack.c.bf16 %v583_v31, %v580_v29  ;;  %v511_v38 = vadd.f32 %v1296_v26, %v510_v34  ;;  %v575_v39 = vadd.f32 %v1296_v26, %v574_v35 }
 0x10e   : > { %1036 = vst [vmem:[%s1309_s17 + $0x38] sm:$0xff] %v988_v36   ;;  %1044 = vst [vmem:[%s1309_s17 + $0x78] sm:$0xff] %v1028_v37   ;;  %v983_v40 = vpack.c.bf16 %v511_v38, %v508_v32  ;;  %v1023_v41 = vpack.c.bf16 %v575_v39, %v572_v33 }
 0x110   : > { %1035 = vst [vmem:[%s1309_s17 + $0x30] sm:$0xff] %v983_v40   ;;  %1043 = vst [vmem:[%s1309_s17 + $0x70] sm:$0xff] %v1023_v41  }
 0x111 PF: > { %s13_s14 = sadd.s32 1, %s1203_s14   ;;  %s1366_s12 = smov %s1199_s13 }
 0x112   : > { %p10_p5 = scmp.ge.s32.totalorder %s13_s14, 4   ;;  %s1367_s13 = smov %s1369_s15 }
 0x114   :  { %12 = sbr.rel (!%p10_p5) target bundleno = 2 (0x2), region = 68 }

// kernel: generator_forward.10
= control target key start
LH: loop header
LB: loop body
LE: loop exit
PB: predicated region body
PF: predicated region fallthrough
CT: control target
= control target key end

     0   :  { %s733_s12 = smov 0   ;;  %s735_s13 = smov 0   ;;  %s806_s0 = inlined_call_operand.vmem [shape: bf16[128,128], index: 0, kind: input, shape index: {}]   ;;  %s807_s1 = inlined_call_operand.vmem [shape: bf16[128,128], index: 1, kind: input, shape index: {}]   ;;  %s808_s2 = inlined_call_operand.vmem [shape: f32[1,128], index: 2, kind: input, shape index: {}]   ;;  %s809_s3 = inlined_call_operand.vmem [shape: bf16[128,128], index: 3, kind: output, shape index: {}]  }
   0x1   :  { %s737_s14 = smov 0  }
   0x2 LB: > { %s25_s15 = sadd.s32 1, %s707_s13  ;;  %p542_p0 = scmp.ge.s32.totalorder %s711_s14, 1  ;;  %s711_s14 = sphi %s737_s14, %s13_s14   ;;  %s707_s13 = sphi %s735_s13, %s811_s13   ;;  %s703_s12 = sphi %s733_s12, %s810_s12  }
   0x3   : > { %p27_p1 = scmp.ge.s32.totalorder %s25_s15, 2  ;;  %p169_p2 = scmp.lt.s32.totalorder %s711_s14, 3 }
   0x5   : > { %s813_s15 = smov (%p27_p1, %s25_s15), 0  ;;  %p170_p3 = pnand %p542_p0, %p169_p2 }
   0x6   : > { %s543_s18 = sshll.u32 (!%p170_p3), %s703_s12, 3 }
   0x7   : > { %173 = sbr.rel (%p170_p3) target bundleno = 249 (0xf9), region = 32  ;;  %p204_p4 = scmp.lt.s32.totalorder (!%p170_p3), %s543_s18, 15 }
   0xc   : > { %v677_v0 = vld [vmem:[%s807_s1 + $0x38] sm:$0xff]   ;;  %v678_v1 = vld [vmem:[%s807_s1 + $0x30] sm:$0xff]   ;;  %s815_s18 = smov (!%p204_p4, %s543_s18), 15  ;;  %v679_v2 = vld [vmem:[%s807_s1 + $0x28] sm:$0xff]  }
   0xd   : > { %613 = vmatprep.subr.bf16.mxu0 %v677_v0  ;;  %637 = vmatprep.subr.bf16.mxu1 %v677_v0  ;;  %s544_s23 = sshll.u32 %s815_s18, 2  ;;  %v680_v3 = vld [vmem:[%s807_s1 + $0x20] sm:$0xff]   ;;  %v681_v6 = vld [vmem:[%s807_s1 + $0x18] sm:$0xff]   ;;  %v682_v7 = vld [vmem:[%s807_s1 + $0x10] sm:$0xff]  }
   0xe   : > { %614 = vmatpush3.bf16.msra.mxu0 %v677_v0  ;;  %645 = vmatpush3.bf16.msra.mxu1 %v677_v0  ;;  %s768_s26 = scalar_lea.vmem %s806_s0, %s544_s23  ;;  %v683_v8 = vld [vmem:[%s807_s1 + $0x8] sm:$0xff]   ;;  %v684_v9 = vld [vmem:[%s807_s1] sm:$0xff]   ;;  %s223_s17 = scalar_lea.vmem %s809_s3, %s544_s23 }
   0xf   : > { %615 = vmatprep.subr.bf16.mxu0 %v678_v1  ;;  %638 = vmatprep.subr.bf16.mxu1 %v678_v1  ;;  %v685_v4 = vld [vmem:[%s768_s26] sm:$0xff]   ;;  %v686_v5 = vld [vmem:[%s768_s26 + $0x10] sm:$0xff]   ;;  %v687_v10 = vld [vmem:[%s768_s26 + $0x8] sm:$0xff]  }
  0x10   : > { %629 = vmatprep.mubr.bf16.mxu0 %v685_v4  ;;  %633 = vmatprep.mubr.bf16.mxu1 %v686_v5  ;;  %v688_v11 = vld [vmem:[%s768_s26 + $0x18] sm:$0xff]   ;;  %v547_v14 = vld [vmem:[%s808_s2] ss:$0 sm:$0xff] }
  0x12   : > { %616 = vmatpush3.bf16.msra.mxu0 %v678_v1  ;;  %646 = vmatpush3.bf16.msra.mxu1 %v678_v1 }
  0x13   : > { %617 = vmatprep.subr.bf16.mxu0 %v679_v2  ;;  %639 = vmatprep.subr.bf16.mxu1 %v679_v2 }
  0x16   : > { %618 = vmatpush3.bf16.msra.mxu0 %v679_v2  ;;  %647 = vmatpush3.bf16.msra.mxu1 %v679_v2 }
  0x17   : > { %619 = vmatprep.subr.bf16.mxu0 %v680_v3  ;;  %640 = vmatprep.subr.bf16.mxu1 %v680_v3 }
  0x1a   : > { %620 = vmatpush3.bf16.msra.mxu0 %v680_v3  ;;  %648 = vmatpush3.bf16.msra.mxu1 %v680_v3 }
  0x1b   : > { %621 = vmatprep.subr.bf16.mxu0 %v681_v6  ;;  %641 = vmatprep.subr.bf16.mxu1 %v681_v6 }
  0x1e   : > { %622 = vmatpush3.bf16.msra.mxu0 %v681_v6  ;;  %649 = vmatpush3.bf16.msra.mxu1 %v681_v6 }
  0x1f   : > { %623 = vmatprep.subr.bf16.mxu0 %v682_v7  ;;  %642 = vmatprep.subr.bf16.mxu1 %v682_v7 }
  0x22   : > { %624 = vmatpush3.bf16.msra.mxu0 %v682_v7  ;;  %650 = vmatpush3.bf16.msra.mxu1 %v682_v7 }
  0x23   : > { %625 = vmatprep.subr.bf16.mxu0 %v683_v8  ;;  %643 = vmatprep.subr.bf16.mxu1 %v683_v8 }
  0x26   : > { %626 = vmatpush3.bf16.msra.mxu0 %v683_v8  ;;  %651 = vmatpush3.bf16.msra.mxu1 %v683_v8 }
  0x27   : > { %627 = vmatprep.subr.bf16.mxu0 %v684_v9  ;;  %644 = vmatprep.subr.bf16.mxu1 %v684_v9 }
  0x2a   : > { %628 = vmatpush3.bf16.msra.mxu0 %v684_v9  ;;  %652 = vmatpush3.bf16.msra.mxu1 %v684_v9 }
  0x2d   : > { %630 = vmatmul.mubr.bf16.vlgmr.msra.gmra.mxu0 %v687_v10  ;;  %634 = vmatmul.mubr.bf16.vlgmr.msra.gmra.mxu1 %v688_v11 }
  0xed   : > { %v631_v12 = vpop.f32.mrf.mxu0  ;;  %v635_v13 = vpop.f32.mrf.mxu1 }
  0xee   : > { %v372_v19 = vadd.f32 %v631_v12, %v547_v14  ;;  %v388_v20 = vadd.f32 %v635_v13, %v547_v14 }
  0xef   : > { %v363_v15 = vpop.f32.mrf.mxu0  ;;  %v379_v16 = vpop.f32.mrf.mxu1 }
  0xf0   : > { %v364_v23 = vadd.f32 %v547_v14, %v363_v15  ;;  %v380_v24 = vadd.f32 %v547_v14, %v379_v16 }
  0xf1   : > { %v632_v17 = vpop.f32.mrf.mxu0  ;;  %v636_v18 = vpop.f32.mrf.mxu1 }
  0xf2   : > { %v375_v21 = vadd.f32 %v632_v17, %v547_v14  ;;  %v391_v22 = vadd.f32 %v636_v18, %v547_v14 }
  0xf3   : > { %v366_v25 = vpop.f32.mrf.mxu0  ;;  %v382_v26 = vpop.f32.mrf.mxu1 }
  0xf4   : > { %v586_v27 = vpack.c.bf16 %v375_v21, %v372_v19  ;;  %v596_v28 = vpack.c.bf16 %v391_v22, %v388_v20  ;;  %v367_v29 = vadd.f32 %v547_v14, %v366_v25  ;;  %v383_v30 = vadd.f32 %v547_v14, %v382_v26 }
  0xf6   : > { %598 = vst [vmem:[%s223_s17 + $0x8] sm:$0xff] %v586_v27   ;;  %600 = vst [vmem:[%s223_s17 + $0x18] sm:$0xff] %v596_v28   ;;  %v581_v31 = vpack.c.bf16 %v367_v29, %v364_v23  ;;  %v591_v32 = vpack.c.bf16 %v383_v30, %v380_v24 }
  0xf8   : > { %582 = vst [vmem:[%s223_s17] sm:$0xff] %v581_v31   ;;  %599 = vst [vmem:[%s223_s17 + $0x10] sm:$0xff] %v591_v32  }
  0xf9 PF: > { %s13_s14 = sadd.s32 1, %s711_s14   ;;  %s810_s12 = smov %s707_s13 }
  0xfa   : > { %p10_p5 = scmp.ge.s32.totalorder %s13_s14, 4   ;;  %s811_s13 = smov %s813_s15 }
  0xfc   :  { %12 = sbr.rel (!%p10_p5) target bundleno = 2 (0x2), region = 68 }

// kernel: generator_forward.11
= control target key start
LH: loop header
LB: loop body
LE: loop exit
PB: predicated region body
PF: predicated region fallthrough
CT: control target
= control target key end

     0   :  { %s320_s16 = smov 0   ;;  %s344_s0 = inlined_call_operand.<no memory space> [shape: f32[1], index: 0, kind: input, shape index: {}]   ;;  %s345_s1 = inlined_call_operand.<no memory space> [shape: f32[1], index: 1, kind: input, shape index: {}]   ;;  %s346_s2 = inlined_call_operand.vmem [shape: bf16[2,8,128], index: 2, kind: input, shape index: {}]   ;;  %s347_s3 = inlined_call_operand.vmem [shape: bf16[2,8,128], index: 3, kind: output, shape index: {}]  }
   0x1   :  { %8 = sst [smem:[#allocation2]] %s344_s0 }
   0x2   :  { %9 = sst [smem:[#allocation3]] %s345_s1 }
   0x3 LB: > { %s261_s17 = sadd.s32 4294967295, %s292_s16   ;;  %p265_p0 = scmp.ge.s32.totalorder %s292_s16, 1  ;;  %s292_s16 = sphi %s320_s16, %s15_s16  }
   0x4   : > { %p138_p1 = scmp.lt.s32.totalorder %s292_s16, 3 }
   0x6   : > { %p139_p2 = pnand %p265_p0, %p138_p1 }
   0x7   : > { %p160_p3 = scmp.lt.s32.totalorder (!%p139_p2), %s261_s17, 1  ;;  %s199_s27 = sld [smem:[#allocation2]] (!%p139_p2) }
   0x8   : > { %142 = sbr.rel (%p139_p2) target bundleno = 304 (0x130), region = 32  ;;  %s203_s28 = sld [smem:[#allocation3]] (!%p139_p2) }
   0xd   : > { %s349_s17 = smov (!%p160_p3, %s261_s17), 1 }
   0xe   : > { %s266_s0 = sshll.u32 %s349_s17, 2  ;;  %v204_v22 = vstv %s203_s28 }
   0xf   : > { %s163_s19 = scalar_lea.vmem %s346_s2, %s266_s0  ;;  %s167_s6 = scalar_lea.vmem %s347_s3, %s266_s0 }
  0x10   : > { %v168_v0 = vld [vmem:[%s163_s19] sm:$0xf] }
  0x11   : > { %v169_v1 = vunpack.c.l.bf16 %v168_v0 }
  0x13   : > { %170 = vadd.xlane.f32.xlu0 %v169_v1  ;;  %v179_v2 = vmul.f32 %v169_v1, %v169_v1 }
  0x17   : > { %180 = vadd.xlane.f32.xlu0 %v179_v2 }
  0x9c   : > { %v171_v3 = vpop.xlane.xlu0 %170 }
  0x9d   : > { %v172_v4 = vrot.slane %v171_v3, 4 }
  0x9f   : > { %v173_v5 = vadd.f32 %v172_v4, %v171_v3 }
  0xa0   : > { %v181_v6 = vpop.xlane.xlu0 %180 }
  0xa1   : > { %v174_v7 = vrot.slane %v173_v5, 2  ;;  %v182_v8 = vrot.slane %v181_v6, 4 }
  0xa3   : > { %v183_v9 = vadd.f32 %v182_v8, %v181_v6  ;;  %v175_v10 = vadd.f32 %v174_v7, %v173_v5 }
  0xa5   : > { %v184_v11 = vrot.slane %v183_v9, 2  ;;  %v176_v12 = vrot.slane %v175_v10, 1 }
  0xa7   : > { %v185_v13 = vadd.f32 %v184_v11, %v183_v9  ;;  %v177_v14 = vadd.f32 %v176_v12, %v175_v10 }
  0xa9   : > { %270 = vpush %v177_v14  ;;  %v186_v15 = vrot.slane %v185_v13, 1 }
  0xab   : > { %v187_v16 = vadd.f32 %v186_v15, %v185_v13 }
  0xad   : > { %272 = vpush %v187_v16 }
  0xda   : > { %s271_s20 = spop %270 }
  0xdb   : > { %s189_s21 = smul.f32 0.0009765625, %s271_s20 }
  0xdd   : > { %s191_s22 = smul.f32 %s189_s21, %s189_s21  ;;  %v197_v19 = vstv %s189_s21 }
  0xde   : > { %s273_s23 = spop %272  ;;  %v198_v20 = vsub.f32 %v169_v1, %v197_v19 }
  0xdf   : > { %s190_s24 = smul.f32 0.0009765625, %s273_s23 }
  0xe1   : > { %s192_s25 = ssub.f32 %s190_s24, %s191_s22 }
  0xe3   : > { %s193_s26 = sadd.f32 0.001, %s192_s25 }
  0xe5   : > { %v194_v17 = vstv %s193_s26 }
  0xe6   : > { %284 = vrsqrt.f32 %v194_v17 }
  0xf3   : > { %v285_v18 = vpop.eup %284 }
  0xf4   : > { %274 = vpush %v285_v18 }
 0x125   : > { %s275_s29 = spop %274 }
 0x126   : > { %s200_s30 = smul.f32 %s275_s29, %s199_s27 }
 0x128   : > { %v201_v21 = vstv %s200_s30 }
 0x129   : > { %v202_v23 = vmul.f32 %v201_v21, %v198_v20 }
 0x12b   : > { %v205_v24 = vadd.f32 %v204_v22, %v202_v23 }
 0x12d   : > { %v206_v25 = vpack.c.bf16 %v205_v24, %v205_v24 }
 0x12f   : > { %207 = vst [vmem:[%s167_s6] sm:$0xf] %v206_v25 }
 0x130 PF: > { %s15_s16 = sadd.s32 1, %s292_s16  }
 0x131   : > { %p12_p4 = scmp.ge.s32.totalorder %s15_s16, 4  }
 0x133   :  { %14 = sbr.rel (!%p12_p4) target bundleno = 3 (0x3), region = 62 }

// kernel: generator_forward.12
= control target key start
LH: loop header
LB: loop body
LE: loop exit
PB: predicated region body
PF: predicated region fallthrough
CT: control target
= control target key end

     0   :  { %s681_s12 = smov 0   ;;  %s683_s13 = smov 0   ;;  %s769_s0 = inlined_call_operand.vmem [shape: bf16[32,256], index: 0, kind: input, shape index: {}]   ;;  %s770_s1 = inlined_call_operand.vmem [shape: bf16[256,128], index: 1, kind: input, shape index: {}]   ;;  %s771_s2 = inlined_call_operand.vmem [shape: f32[1,128], index: 2, kind: input, shape index: {}]   ;;  %s772_s3 = inlined_call_operand.vmem [shape: bf16[32,128], index: 3, kind: output, shape index: {}]  }
   0x1   :  { %s685_s14 = smov 0  }
   0x2 LB: > { %s25_s15 = sadd.s32 1, %s655_s13  ;;  %p535_p0 = scmp.ge.s32.totalorder %s659_s14, 1  ;;  %s659_s14 = sphi %s685_s14, %s13_s14   ;;  %s655_s13 = sphi %s683_s13, %s774_s13   ;;  %s651_s12 = sphi %s681_s12, %s773_s12  }
   0x3   : > { %p27_p1 = scmp.ge.s32.totalorder %s25_s15, 2  ;;  %p170_p2 = scmp.lt.s32.totalorder %s659_s14, 3 }
   0x5   : > { %s776_s15 = smov (%p27_p1, %s25_s15), 0  ;;  %p171_p3 = pnand %p535_p0, %p170_p2 }
   0x6   : > { %s536_s18 = sshll.u32 (!%p171_p3), %s651_s12, 1 }
   0x7   : > { %174 = sbr.rel (%p171_p3) target bundleno = 251 (0xfb), region = 32  ;;  %p206_p4 = scmp.lt.s32.totalorder (!%p171_p3), %s536_s18, 3 }
   0xc   : > { %v618_v0 = vld [vmem:[%s770_s1 + $0x78] sm:$0xff]   ;;  %v620_v2 = vld [vmem:[%s770_s1 + $0x70] sm:$0xff]   ;;  %v622_v4 = vld [vmem:[%s770_s1 + $0x68] sm:$0xff]   ;;  %s778_s18 = smov (!%p206_p4, %s536_s18), 3 }
   0xd   : > { %v619_v1 = vld [vmem:[%s770_s1 + $0x38] sm:$0xff]   ;;  %572 = vmatprep.subr.bf16.mxu0 %v618_v0  ;;  %v621_v3 = vld [vmem:[%s770_s1 + $0x30] sm:$0xff]   ;;  %v623_v5 = vld [vmem:[%s770_s1 + $0x28] sm:$0xff]   ;;  %s564_s6 = sshll.u32 %s778_s18, 3  ;;  %s540_s5 = sshll.u32 %s778_s18, 2 }
   0xe   : > { %573 = vmatpush3.bf16.msra.mxu0 %v619_v1  ;;  %v624_v6 = vld [vmem:[%s770_s1 + $0x60] sm:$0xff]   ;;  %v626_v8 = vld [vmem:[%s770_s1 + $0x58] sm:$0xff]   ;;  %s210_s11 = scalar_lea.vmem %s769_s0, %s564_s6  ;;  %v628_v10 = vld [vmem:[%s770_s1 + $0x50] sm:$0xff]   ;;  %s226_s8 = scalar_lea.vmem %s772_s3, %s540_s5 }
   0xf   : > { %574 = vmatprep.subr.bf16.mxu0 %v620_v2  ;;  %v625_v7 = vld [vmem:[%s770_s1 + $0x20] sm:$0xff]   ;;  %v627_v9 = vld [vmem:[%s770_s1 + $0x18] sm:$0xff]   ;;  %v629_v12 = vld [vmem:[%s770_s1 + $0x10] sm:$0xff]  }
  0x10   : > { %v636_v11 = vld [vmem:[%s210_s11 + $0x4] ss:$8 sps:$4 sm:$0xff]   ;;  %v634_v17 = vld [vmem:[%s210_s11] ss:$8 sps:$4 sm:$0xff]  }
  0x11   : > { %408 = vmatprep.mubr.bf16.mxu0 %v636_v11  ;;  %v630_v13 = vld [vmem:[%s770_s1 + $0x48] sm:$0xff]   ;;  %v632_v15 = vld [vmem:[%s770_s1 + $0x40] sm:$0xff]  }
  0x12   : > { %575 = vmatpush3.bf16.msra.mxu0 %v621_v3  ;;  %v631_v14 = vld [vmem:[%s770_s1 + $0x8] sm:$0xff]   ;;  %v633_v16 = vld [vmem:[%s770_s1] sm:$0xff]  }
  0x13   : > { %576 = vmatprep.subr.bf16.mxu0 %v622_v4  ;;  %v541_v22 = vld [vmem:[%s771_s2] ss:$0 sm:$0xff] }
  0x16   : > { %577 = vmatpush3.bf16.msra.mxu0 %v623_v5 }
  0x17   : > { %578 = vmatprep.subr.bf16.mxu0 %v624_v6 }
  0x1a   : > { %579 = vmatpush3.bf16.msra.mxu0 %v625_v7 }
  0x1b   : > { %580 = vmatprep.subr.bf16.mxu0 %v626_v8 }
  0x1e   : > { %581 = vmatpush3.bf16.msra.mxu0 %v627_v9 }
  0x1f   : > { %582 = vmatprep.subr.bf16.mxu0 %v628_v10 }
  0x22   : > { %583 = vmatpush3.bf16.msra.mxu0 %v629_v12 }
  0x23   : > { %584 = vmatprep.subr.bf16.mxu0 %v630_v13 }
  0x26   : > { %585 = vmatpush3.bf16.msra.mxu0 %v631_v14 }
  0x27   : > { %586 = vmatprep.subr.bf16.mxu0 %v632_v15 }
  0x2a   : > { %587 = vmatpush3.bf16.msra.mxu0 %v633_v16 }
  0x2d   : > { %409 = vmatmul.mubr.bf16.vlgmr.msra.gmra.mxu0 %v634_v17 }
  0xed   : > { %v588_v18 = vpop.f32.mrf.mxu0 }
  0xef   : > { %v589_v19 = vpop.f32.mrf.mxu0 }
  0xf0   : > { %v590_v21 = vadd.f32 %v589_v19, %v588_v18 }
  0xf1   : > { %v591_v20 = vpop.f32.mrf.mxu0 }
  0xf2   : > { %v411_v25 = vadd.f32 %v590_v21, %v541_v22 }
  0xf3   : > { %v592_v23 = vpop.f32.mrf.mxu0 }
  0xf4   : > { %v593_v24 = vadd.f32 %v592_v23, %v591_v20 }
  0xf6   : > { %v414_v26 = vadd.f32 %v593_v24, %v541_v22 }
  0xf8   : > { %v570_v27 = vpack.c.bf16 %v414_v26, %v411_v25 }
  0xfa   : > { %571 = vst [vmem:[%s226_s8] sm:$0xff] %v570_v27  }
  0xfb PF: > { %s13_s14 = sadd.s32 1, %s659_s14   ;;  %s773_s12 = smov %s655_s13 }
  0xfc   : > { %p10_p5 = scmp.ge.s32.totalorder %s13_s14, 4   ;;  %s774_s13 = smov %s776_s15 }
  0xfe   :  { %12 = sbr.rel (!%p10_p5) target bundleno = 2 (0x2), region = 68 }

// kernel: generator_forward.14
= control target key start
LH: loop header
LB: loop body
LE: loop exit
PB: predicated region body
PF: predicated region fallthrough
CT: control target
= control target key end

     0   :  { %s360_s16 = smov 0   ;;  %s384_s0 = inlined_call_operand.<no memory space> [shape: f32[1], index: 0, kind: input, shape index: {}]   ;;  %s385_s1 = inlined_call_operand.<no memory space> [shape: f32[1], index: 1, kind: input, shape index: {}]   ;;  %s386_s2 = inlined_call_operand.vmem [shape: bf16[2,16,128], index: 2, kind: input, shape index: {}]   ;;  %s387_s3 = inlined_call_operand.vmem [shape: bf16[2,16,128], index: 3, kind: output, shape index: {}]  }
   0x1   :  { %8 = sst [smem:[#allocation2]] %s384_s0 }
   0x2   :  { %9 = sst [smem:[#allocation3]] %s385_s1 }
   0x3 LB: > { %s284_s17 = sadd.s32 4294967295, %s332_s16   ;;  %p288_p0 = scmp.ge.s32.totalorder %s332_s16, 1  ;;  %s332_s16 = sphi %s360_s16, %s15_s16  }
   0x4   : > { %p139_p1 = scmp.lt.s32.totalorder %s332_s16, 3 }
   0x6   : > { %p140_p2 = pnand %p288_p0, %p139_p1 }
   0x7   : > { %p163_p3 = scmp.lt.s32.totalorder (!%p140_p2), %s284_s17, 1  ;;  %s210_s27 = sld [smem:[#allocation2]] (!%p140_p2) }
   0x8   : > { %143 = sbr.rel (%p140_p2) target bundleno = 306 (0x132), region = 32  ;;  %s215_s28 = sld [smem:[#allocation3]] (!%p140_p2) }
   0xd   : > { %s389_s17 = smov (!%p163_p3, %s284_s17), 1 }
   0xe   : > { %s297_s0 = sshll.u32 %s389_s17, 3  ;;  %v216_v27 = vstv %s215_s28 }
   0xf   : > { %s167_s19 = scalar_lea.vmem %s386_s2, %s297_s0  ;;  %s172_s6 = scalar_lea.vmem %s387_s3, %s297_s0 }
  0x10   : > { %v302_v0 = vld [vmem:[%s167_s19] sm:$0xff]  }
  0x11   : > { %v303_v1 = vunpack.c.l.bf16 %v302_v0  ;;  %v304_v2 = vunpack.c.h.bf16 %v302_v0 }
  0x13   : > { %v177_v3 = vadd.f32 %v304_v2, %v303_v1  ;;  %v187_v4 = vmul.f32 %v303_v1, %v303_v1  ;;  %v188_v5 = vmul.f32 %v304_v2, %v304_v2 }
  0x15   : > { %178 = vadd.xlane.f32.xlu0 %v177_v3  ;;  %v189_v6 = vadd.f32 %v188_v5, %v187_v4 }
  0x19   : > { %190 = vadd.xlane.f32.xlu0 %v189_v6 }
  0x9e   : > { %v179_v7 = vpop.xlane.xlu0 %178 }
  0x9f   : > { %v180_v8 = vrot.slane %v179_v7, 4 }
  0xa1   : > { %v181_v9 = vadd.f32 %v180_v8, %v179_v7 }
  0xa2   : > { %v191_v10 = vpop.xlane.xlu0 %190 }
  0xa3   : > { %v182_v11 = vrot.slane %v181_v9, 2  ;;  %v192_v12 = vrot.slane %v191_v10, 4 }
  0xa5   : > { %v193_v13 = vadd.f32 %v192_v12, %v191_v10  ;;  %v183_v14 = vadd.f32 %v182_v11, %v181_v9 }
  0xa7   : > { %v194_v15 = vrot.slane %v193_v13, 2  ;;  %v184_v16 = vrot.slane %v183_v14, 1 }
  0xa9   : > { %v195_v17 = vadd.f32 %v194_v15, %v193_v13  ;;  %v185_v18 = vadd.f32 %v184_v16, %v183_v14 }
  0xab   : > { %310 = vpush %v185_v18  ;;  %v196_v19 = vrot.slane %v195_v17, 1 }
  0xad   : > { %v197_v20 = vadd.f32 %v196_v19, %v195_v17 }
  0xaf   : > { %312 = vpush %v197_v20 }
  0xdc   : > { %s311_s20 = spop %310 }
  0xdd   : > { %s199_s21 = smul.f32 0.00048828125, %s311_s20 }
  0xdf   : > { %s201_s22 = smul.f32 %s199_s21, %s199_s21  ;;  %v207_v23 = vstv %s199_s21 }
  0xe0   : > { %s313_s23 = spop %312  ;;  %v208_v24 = vsub.f32 %v303_v1, %v207_v23  ;;  %v209_v25 = vsub.f32 %v304_v2, %v207_v23 }
  0xe1   : > { %s200_s24 = smul.f32 0.00048828125, %s313_s23 }
  0xe3   : > { %s202_s25 = ssub.f32 %s200_s24, %s201_s22 }
  0xe5   : > { %s203_s26 = sadd.f32 0.001, %s202_s25 }
  0xe7   : > { %v204_v21 = vstv %s203_s26 }
  0xe8   : > { %324 = vrsqrt.f32 %v204_v21 }
  0xf5   : > { %v325_v22 = vpop.eup %324 }
  0xf6   : > { %314 = vpush %v325_v22 }
 0x127   : > { %s315_s29 = spop %314 }
 0x128   : > { %s211_s30 = smul.f32 %s315_s29, %s210_s27 }
 0x12a   : > { %v212_v26 = vstv %s211_s30 }
 0x12b   : > { %v213_v28 = vmul.f32 %v212_v26, %v208_v24  ;;  %v214_v29 = vmul.f32 %v212_v26, %v209_v25 }
 0x12d   : > { %v217_v30 = vadd.f32 %v216_v27, %v213_v28  ;;  %v218_v31 = vadd.f32 %v216_v27, %v214_v29 }
 0x12f   : > { %v308_v32 = vpack.c.bf16 %v218_v31, %v217_v30 }
 0x131   : > { %309 = vst [vmem:[%s172_s6] sm:$0xff] %v308_v32  }
 0x132 PF: > { %s15_s16 = sadd.s32 1, %s332_s16  }
 0x133   : > { %p12_p4 = scmp.ge.s32.totalorder %s15_s16, 4  }
 0x135   :  { %14 = sbr.rel (!%p12_p4) target bundleno = 3 (0x3), region = 62 }

// kernel: generator_forward.13
= control target key start
LH: loop header
LB: loop body
LE: loop exit
PB: predicated region body
PF: predicated region fallthrough
CT: control target
= control target key end

     0   :  { %s844_s12 = smov 0   ;;  %s846_s13 = smov 0   ;;  %s959_s0 = inlined_call_operand.vmem [shape: bf16[32,384], index: 0, kind: input, shape index: {}]   ;;  %s960_s1 = inlined_call_operand.vmem [shape: bf16[384,128], index: 1, kind: input, shape index: {}]   ;;  %s961_s2 = inlined_call_operand.vmem [shape: f32[1,128], index: 2, kind: input, shape index: {}]   ;;  %s962_s3 = inlined_call_operand.vmem [shape: bf16[32,128], index: 3, kind: output, shape index: {}]  }
   0x1   :  { %s848_s14 = smov 0  }
   0x2 LB: > { %s25_s15 = sadd.s32 1, %s816_s13  ;;  %p648_p0 = scmp.ge.s32.totalorder %s820_s14, 1  ;;  %s820_s14 = sphi %s848_s14, %s13_s14   ;;  %s816_s13 = sphi %s846_s13, %s964_s13   ;;  %s812_s12 = sphi %s844_s12, %s963_s12  }
   0x3   : > { %p27_p1 = scmp.ge.s32.totalorder %s25_s15, 2  ;;  %p170_p2 = scmp.lt.s32.totalorder %s820_s14, 3 }
   0x5   : > { %s966_s15 = smov (%p27_p1, %s25_s15), 0  ;;  %p171_p3 = pnand %p648_p0, %p170_p2 }
   0x6   : > { %s649_s5 = sshll.u32 (!%p171_p3), %s812_s12, 1 }
   0x7   : > { %174 = sbr.rel (%p171_p3) target bundleno = 253 (0xfd), region = 32  ;;  %p206_p4 = scmp.lt.s32.totalorder (!%p171_p3), %s649_s5, 3 }
   0xc   : > { %v770_v0 = vld [vmem:[%s960_s1 + $0x78] sm:$0xff]   ;;  %v822_v1 = vmov 0.0   ;;  %v773_v4 = vld [vmem:[%s960_s1 + $0x70] sm:$0xff]   ;;  %vm823_vm0 = vmmov 0   ;;  %v776_v7 = vld [vmem:[%s960_s1 + $0x68] sm:$0xff]   ;;  %s968_s5 = smov (!%p206_p4, %s649_s5), 3 }
   0xd   : > { %723 = vmatprep.subr.bf16.mxu1 %v822_v1  ;;  %v771_v2 = vld [vmem:[%s960_s1 + $0x38] sm:$0xff]   ;;  %692 = vmatprep.subr.bf16.mxu0 %v770_v0  ;;  %v774_v5 = vld [vmem:[%s960_s1 + $0x30] sm:$0xff]   ;;  %v777_v8 = vld [vmem:[%s960_s1 + $0x28] sm:$0xff]   ;;  %s743_s27 = smul.u32 12, %s968_s5  ;;  %s652_s24 = sshll.u32 %s968_s5, 2 }
   0xe   : > { %v772_v3 = vld [vmem:[%s960_s1 + $0xb8] sm:$0xff]   ;;  %693 = vmatpush3.bf16.msra.mxu0 %v771_v2  ;;  %739 = vmatprep.mubr.msk.bf16.mxu1 %vm823_vm0, %v822_v1  ;;  %v775_v6 = vld [vmem:[%s960_s1 + $0xb0] sm:$0xff]   ;;  %v778_v9 = vld [vmem:[%s960_s1 + $0xa8] sm:$0xff]  }
   0xf   : > { %724 = vmatpush3.bf16.msra.mxu1 %v772_v3  ;;  %694 = vmatprep.subr.bf16.mxu0 %v773_v4  ;;  %v779_v10 = vld [vmem:[%s960_s1 + $0x60] sm:$0xff]   ;;  %v782_v13 = vld [vmem:[%s960_s1 + $0x58] sm:$0xff]   ;;  %v785_v16 = vld [vmem:[%s960_s1 + $0x50] sm:$0xff]   ;;  %s210_s10 = scalar_lea.vmem %s959_s0, %s743_s27  ;;  %s226_s27 = scalar_lea.vmem %s962_s3, %s652_s24 }
  0x10   : > { %725 = vmatprep.subr.bf16.mxu1 %v822_v1  ;;  %v780_v11 = vld [vmem:[%s960_s1 + $0x20] sm:$0xff]   ;;  %v783_v14 = vld [vmem:[%s960_s1 + $0x18] sm:$0xff]   ;;  %v786_v17 = vld [vmem:[%s960_s1 + $0x10] sm:$0xff]  }
  0x11   : > { %v781_v12 = vld [vmem:[%s960_s1 + $0xa0] sm:$0xff]   ;;  %v784_v15 = vld [vmem:[%s960_s1 + $0x98] sm:$0xff]   ;;  %v787_v18 = vld [vmem:[%s960_s1 + $0x90] sm:$0xff]  }
  0x12   : > { %695 = vmatpush3.bf16.msra.mxu0 %v774_v5  ;;  %v788_v19 = vld [vmem:[%s960_s1 + $0x48] sm:$0xff]   ;;  %v791_v22 = vld [vmem:[%s960_s1 + $0x40] sm:$0xff]  }
  0x13   : > { %726 = vmatpush3.bf16.msra.mxu1 %v775_v6  ;;  %696 = vmatprep.subr.bf16.mxu0 %v776_v7  ;;  %v789_v20 = vld [vmem:[%s960_s1 + $0x8] sm:$0xff]   ;;  %v796_v23 = vld [vmem:[%s210_s10 + $0x4] ss:$12 sps:$4 sm:$0xff]   ;;  %v653_v33 = vld [vmem:[%s961_s2] ss:$0 sm:$0xff] }
  0x14   : > { %727 = vmatprep.subr.bf16.mxu1 %v822_v1  ;;  %v790_v21 = vld [vmem:[%s960_s1 + $0x88] sm:$0xff]   ;;  %v792_v24 = vld [vmem:[%s960_s1] sm:$0xff]   ;;  %480 = vmatprep.mubr.bf16.mxu0 %v796_v23 }
  0x15   : > { %v793_v25 = vld [vmem:[%s960_s1 + $0x80] sm:$0xff]   ;;  %v797_v27 = vld [vmem:[%s210_s10 + $0x8] ss:$12 sps:$4 sm:$0xff]  }
  0x16   : > { %697 = vmatpush3.bf16.msra.mxu0 %v777_v8  ;;  %v794_v26 = vld [vmem:[%s210_s10] ss:$12 sps:$4 sm:$0xff]  }
  0x17   : > { %728 = vmatpush3.bf16.msra.mxu1 %v778_v9  ;;  %698 = vmatprep.subr.bf16.mxu0 %v779_v10 }
  0x18   : > { %729 = vmatprep.subr.bf16.mxu1 %v822_v1 }
  0x1a   : > { %699 = vmatpush3.bf16.msra.mxu0 %v780_v11 }
  0x1b   : > { %730 = vmatpush3.bf16.msra.mxu1 %v781_v12  ;;  %700 = vmatprep.subr.bf16.mxu0 %v782_v13 }
  0x1c   : > { %731 = vmatprep.subr.bf16.mxu1 %v822_v1 }
  0x1e   : > { %701 = vmatpush3.bf16.msra.mxu0 %v783_v14 }
  0x1f   : > { %732 = vmatpush3.bf16.msra.mxu1 %v784_v15  ;;  %702 = vmatprep.subr.bf16.mxu0 %v785_v16 }
  0x20   : > { %733 = vmatprep.subr.bf16.mxu1 %v822_v1 }
  0x22   : > { %703 = vmatpush3.bf16.msra.mxu0 %v786_v17 }
  0x23   : > { %734 = vmatpush3.bf16.msra.mxu1 %v787_v18  ;;  %704 = vmatprep.subr.bf16.mxu0 %v788_v19 }
  0x24   : > { %735 = vmatprep.subr.bf16.mxu1 %v822_v1 }
  0x26   : > { %705 = vmatpush3.bf16.msra.mxu0 %v789_v20 }
  0x27   : > { %736 = vmatpush3.bf16.msra.mxu1 %v790_v21  ;;  %706 = vmatprep.subr.bf16.mxu0 %v791_v22 }
  0x28   : > { %737 = vmatprep.subr.bf16.mxu1 %v822_v1 }
  0x2a   : > { %707 = vmatpush3.bf16.msra.mxu0 %v792_v24 }
  0x2b   : > { %738 = vmatpush3.bf16.msra.mxu1 %v793_v25 }
  0x2d   : > { %481 = vmatmul.mubr.bf16.vlgmr.msra.gmra.mxu0 %v794_v26 }
  0x2e   : > { %740 = vmatmul.mubr.bf16.vlgmr.msra.gmra.mxu1 %v797_v27 }
  0xed   : > { %v708_v28 = vpop.f32.mrf.mxu0 }
  0xee   : > { %v523_v29 = vpop.f32.mrf.mxu1 }
  0xef   : > { %v709_v30 = vpop.f32.mrf.mxu0 }
  0xf0   : > { %v710_v31 = vadd.f32 %v709_v30, %v708_v28  ;;  %v741_v32 = vpop.f32.mrf.mxu1 }
  0xf1   : > { %v711_v34 = vpop.f32.mrf.mxu0 }
  0xf2   : > { %v526_v35 = vpop.f32.mrf.mxu1  ;;  %v483_v37 = vadd.f32 %v710_v31, %v653_v33 }
  0xf3   : > { %v712_v36 = vpop.f32.mrf.mxu0 }
  0xf4   : > { %v713_v38 = vadd.f32 %v712_v36, %v711_v34  ;;  %v742_v39 = vpop.f32.mrf.mxu1  ;;  %v524_v41 = vadd.f32 %v523_v29, %v483_v37 }
  0xf6   : > { %v486_v40 = vadd.f32 %v713_v38, %v653_v33 }
  0xf8   : > { %v527_v42 = vadd.f32 %v526_v35, %v486_v40 }
  0xfa   : > { %v690_v43 = vpack.c.bf16 %v527_v42, %v524_v41 }
  0xfc   : > { %691 = vst [vmem:[%s226_s27] sm:$0xff] %v690_v43  }
  0xfd PF: > { %s13_s14 = sadd.s32 1, %s820_s14   ;;  %s963_s12 = smov %s816_s13 }
  0xfe   : > { %p10_p5 = scmp.ge.s32.totalorder %s13_s14, 4   ;;  %s964_s13 = smov %s966_s15 }
 0x100   :  { %12 = sbr.rel (!%p10_p5) target bundleno = 2 (0x2), region = 68 }

// kernel: generator_forward.15
= control target key start
LH: loop header
LB: loop body
LE: loop exit
PB: predicated region body
PF: predicated region fallthrough
CT: control target
= control target key end

     0   :  { %s1167_s12 = smov 0   ;;  %s1169_s13 = smov 0   ;;  %s1340_s0 = inlined_call_operand.vmem [shape: bf16[128,512], index: 0, kind: input, shape index: {}]   ;;  %s1341_s1 = inlined_call_operand.vmem [shape: bf16[512,128], index: 1, kind: input, shape index: {}]   ;;  %s1342_s2 = inlined_call_operand.vmem [shape: f32[1,128], index: 2, kind: input, shape index: {}]   ;;  %s1343_s3 = inlined_call_operand.vmem [shape: bf16[128,128], index: 3, kind: output, shape index: {}]  }
   0x1   :  { %s1171_s14 = smov 0  }
   0x2 LB: > { %s25_s15 = sadd.s32 1, %s1141_s13  ;;  %p866_p0 = scmp.ge.s32.totalorder %s1145_s14, 1  ;;  %s1145_s14 = sphi %s1171_s14, %s13_s14   ;;  %s1141_s13 = sphi %s1169_s13, %s1345_s13   ;;  %s1137_s12 = sphi %s1167_s12, %s1344_s12  }
   0x3   : > { %p27_p1 = scmp.ge.s32.totalorder %s25_s15, 2  ;;  %p170_p2 = scmp.lt.s32.totalorder %s1145_s14, 3 }
   0x5   : > { %s1347_s15 = smov (%p27_p1, %s25_s15), 0  ;;  %p171_p3 = pnand %p866_p0, %p170_p2 }
   0x6   : > { %s867_s25 = sshll.u32 (!%p171_p3), %s1137_s12, 3 }
   0x7   : > { %174 = sbr.rel (%p171_p3) target bundleno = 278 (0x116), region = 32  ;;  %p206_p4 = scmp.lt.s32.totalorder (!%p171_p3), %s867_s25, 15 }
   0xc   : > { %v1067_v0 = vld [vmem:[%s1341_s1 + $0x78] sm:$0xff]   ;;  %v1071_v4 = vld [vmem:[%s1341_s1 + $0x70] sm:$0xff]   ;;  %v1075_v8 = vld [vmem:[%s1341_s1 + $0x68] sm:$0xff]   ;;  %s1349_s25 = smov (!%p206_p4, %s867_s25), 15 }
   0xd   : > { %v1068_v1 = vld [vmem:[%s1341_s1 + $0xf8] sm:$0xff]   ;;  %963 = vmatprep.subr.bf16.mxu0 %v1067_v0  ;;  %v1072_v5 = vld [vmem:[%s1341_s1 + $0xf0] sm:$0xff]   ;;  %v1076_v9 = vld [vmem:[%s1341_s1 + $0xe8] sm:$0xff]   ;;  %s931_s24 = sshll.u32 %s1349_s25, 4  ;;  %s871_s17 = sshll.u32 %s1349_s25, 2 }
   0xe   : > { %v1069_v2 = vld [vmem:[%s1341_s1 + $0x38] sm:$0xff]   ;;  %1003 = vmatprep.subr.bf16.mxu1 %v1068_v1  ;;  %v1073_v6 = vld [vmem:[%s1341_s1 + $0x30] sm:$0xff]   ;;  %v1077_v10 = vld [vmem:[%s1341_s1 + $0x28] sm:$0xff]   ;;  %s1284_s12 = scalar_lea.vmem %s1340_s0, %s931_s24  ;;  %s1319_s20 = scalar_lea.vmem %s1343_s3, %s871_s17 }
   0xf   : > { %v1070_v3 = vld [vmem:[%s1341_s1 + $0xb8] sm:$0xff]   ;;  %964 = vmatpush3.bf16.msra.mxu0 %v1069_v2  ;;  %v1074_v7 = vld [vmem:[%s1341_s1 + $0xb0] sm:$0xff]   ;;  %v1078_v11 = vld [vmem:[%s1341_s1 + $0xa8] sm:$0xff]  }
  0x10   : > { %1004 = vmatpush3.bf16.msra.mxu1 %v1070_v3  ;;  %965 = vmatprep.subr.bf16.mxu0 %v1071_v4  ;;  %v1079_v12 = vld [vmem:[%s1341_s1 + $0x60] sm:$0xff]   ;;  %v1083_v16 = vld [vmem:[%s1341_s1 + $0x58] sm:$0xff]   ;;  %v1087_v20 = vld [vmem:[%s1341_s1 + $0x50] sm:$0xff]  }
  0x11   : > { %1005 = vmatprep.subr.bf16.mxu1 %v1072_v5  ;;  %v1080_v13 = vld [vmem:[%s1341_s1 + $0xe0] sm:$0xff]   ;;  %v1084_v17 = vld [vmem:[%s1341_s1 + $0xd8] sm:$0xff]   ;;  %v1088_v21 = vld [vmem:[%s1341_s1 + $0xd0] sm:$0xff]  }
  0x12   : > { %v1081_v14 = vld [vmem:[%s1341_s1 + $0x20] sm:$0xff]   ;;  %v1085_v18 = vld [vmem:[%s1341_s1 + $0x18] sm:$0xff]   ;;  %v1089_v22 = vld [vmem:[%s1341_s1 + $0x10] sm:$0xff]  }
  0x13   : > { %966 = vmatpush3.bf16.msra.mxu0 %v1073_v6  ;;  %v1082_v15 = vld [vmem:[%s1341_s1 + $0xa0] sm:$0xff]   ;;  %v1086_v19 = vld [vmem:[%s1341_s1 + $0x98] sm:$0xff]   ;;  %v1090_v23 = vld [vmem:[%s1341_s1 + $0x90] sm:$0xff]  }
  0x14   : > { %1006 = vmatpush3.bf16.msra.mxu1 %v1074_v7  ;;  %967 = vmatprep.subr.bf16.mxu0 %v1075_v8  ;;  %v1091_v24 = vld [vmem:[%s1341_s1 + $0x48] sm:$0xff]   ;;  %v1095_v28 = vld [vmem:[%s1341_s1 + $0x40] sm:$0xff]  }
  0x15   : > { %1007 = vmatprep.subr.bf16.mxu1 %v1076_v9  ;;  %v1092_v25 = vld [vmem:[%s1341_s1 + $0xc8] sm:$0xff]   ;;  %v1096_v29 = vld [vmem:[%s1341_s1 + $0xc0] sm:$0xff]  }
  0x16   : > { %v1093_v26 = vld [vmem:[%s1341_s1 + $0x8] sm:$0xff]   ;;  %v1097_v30 = vld [vmem:[%s1341_s1] sm:$0xff]  }
  0x17   : > { %968 = vmatpush3.bf16.msra.mxu0 %v1077_v10  ;;  %v1094_v27 = vld [vmem:[%s1341_s1 + $0x88] sm:$0xff]   ;;  %v1098_v31 = vld [vmem:[%s1341_s1 + $0x80] sm:$0xff]  }
  0x18   : > { %1008 = vmatpush3.bf16.msra.mxu1 %v1078_v11  ;;  %969 = vmatprep.subr.bf16.mxu0 %v1079_v12  ;;  %v1099_v32 = vld [vmem:[%s1284_s12] ss:$16 sps:$4 sm:$0xff]   ;;  %v1101_v33 = vld [vmem:[%s1284_s12 + $0x4] ss:$16 sps:$4 sm:$0xff]   ;;  %v1102_v34 = vld [vmem:[%s1284_s12 + $0x8] ss:$16 sps:$4 sm:$0xff]  }
  0x19   : > { %1009 = vmatprep.subr.bf16.mxu1 %v1080_v13  ;;  %v1104_v35 = vld [vmem:[%s1284_s12 + $0xc] ss:$16 sps:$4 sm:$0xff]   ;;  %620 = vmatprep.mubr.bf16.mxu0 %v1101_v33  ;;  %v1105_v36 = vld [vmem:[%s1284_s12 + $0x24] ss:$16 sps:$4 sm:$0xff]   ;;  %v1109_v38 = vld [vmem:[%s1284_s12 + $0x20] ss:$16 sps:$4 sm:$0xff]  }
  0x1a   : > { %685 = vmatprep.mubr.bf16.mxu1 %v1104_v35  ;;  %v1107_v37 = vld [vmem:[%s1284_s12 + $0x2c] ss:$16 sps:$4 sm:$0xff]   ;;  %v1110_v39 = vld [vmem:[%s1284_s12 + $0x28] ss:$16 sps:$4 sm:$0xff]   ;;  %v1111_v40 = vld [vmem:[%s1284_s12 + $0x44] ss:$16 sps:$4 sm:$0xff]  }
  0x1b   : > { %970 = vmatpush3.bf16.msra.mxu0 %v1081_v14  ;;  %v1113_v41 = vld [vmem:[%s1284_s12 + $0x4c] ss:$16 sps:$4 sm:$0xff]   ;;  %v1115_v42 = vld [vmem:[%s1284_s12 + $0x40] ss:$16 sps:$4 sm:$0xff]   ;;  %v1116_v43 = vld [vmem:[%s1284_s12 + $0x48] ss:$16 sps:$4 sm:$0xff]  }
  0x1c   : > { %1010 = vmatpush3.bf16.msra.mxu1 %v1082_v15  ;;  %971 = vmatprep.subr.bf16.mxu0 %v1083_v16  ;;  %v1117_v44 = vld [vmem:[%s1284_s12 + $0x64] ss:$16 sps:$4 sm:$0xff]   ;;  %v1119_v45 = vld [vmem:[%s1284_s12 + $0x6c] ss:$16 sps:$4 sm:$0xff]   ;;  %v1121_v46 = vld [vmem:[%s1284_s12 + $0x60] ss:$16 sps:$4 sm:$0xff]  }
  0x1d   : > { %1011 = vmatprep.subr.bf16.mxu1 %v1084_v17  ;;  %v1122_v47 = vld [vmem:[%s1284_s12 + $0x68] ss:$16 sps:$4 sm:$0xff]   ;;  %v1311_v53 = vld [vmem:[%s1342_s2] ss:$0 sm:$0xff] }
  0x1f   : > { %972 = vmatpush3.bf16.msra.mxu0 %v1085_v18 }
  0x20   : > { %1012 = vmatpush3.bf16.msra.mxu1 %v1086_v19  ;;  %973 = vmatprep.subr.bf16.mxu0 %v1087_v20 }
  0x21   : > { %1013 = vmatprep.subr.bf16.mxu1 %v1088_v21 }
  0x23   : > { %974 = vmatpush3.bf16.msra.mxu0 %v1089_v22 }
  0x24   : > { %1014 = vmatpush3.bf16.msra.mxu1 %v1090_v23  ;;  %975 = vmatprep.subr.bf16.mxu0 %v1091_v24 }
  0x25   : > { %1015 = vmatprep.subr.bf16.mxu1 %v1092_v25 }
  0x27   : > { %976 = vmatpush3.bf16.msra.mxu0 %v1093_v26 }
  0x28   : > { %1016 = vmatpush3.bf16.msra.mxu1 %v1094_v27  ;;  %977 = vmatprep.subr.bf16.mxu0 %v1095_v28 }
  0x29   : > { %1017 = vmatprep.subr.bf16.mxu1 %v1096_v29 }
  0x2b   : > { %978 = vmatpush3.bf16.msra.mxu0 %v1097_v30 }
  0x2c   : > { %1018 = vmatpush3.bf16.msra.mxu1 %v1098_v31 }
  0x2e   : > { %621 = vmatmul.mubr.bf16.vlgmr.msra.gmra.mxu0 %v1099_v32 }
  0x2f   : > { %686 = vmatmul.mubr.bf16.vlgmr.msra.gmra.mxu1 %v1102_v34  ;;  %628 = vmatprep.mubr.bf16.mxu0 %v1105_v36 }
  0x30   : > { %693 = vmatprep.mubr.bf16.mxu1 %v1107_v37 }
  0x36   : > { %629 = vmatmul.mubr.bf16.gmra.mxu0 %v1109_v38 }
  0x37   : > { %694 = vmatmul.mubr.bf16.gmra.mxu1 %v1110_v39  ;;  %636 = vmatprep.mubr.bf16.mxu0 %v1111_v40 }
  0x38   : > { %701 = vmatprep.mubr.bf16.mxu1 %v1113_v41 }
  0x3e   : > { %637 = vmatmul.mubr.bf16.gmra.mxu0 %v1115_v42 }
  0x3f   : > { %702 = vmatmul.mubr.bf16.gmra.mxu1 %v1116_v43  ;;  %644 = vmatprep.mubr.bf16.mxu0 %v1117_v44 }
  0x40   : > { %709 = vmatprep.mubr.bf16.mxu1 %v1119_v45 }
  0x46   : > { %645 = vmatmul.mubr.bf16.gmra.mxu0 %v1121_v46 }
  0x47   : > { %710 = vmatmul.mubr.bf16.gmra.mxu1 %v1122_v47 }
  0xee   : > { %v979_v48 = vpop.f32.mrf.mxu0 }
  0xef   : > { %v1019_v49 = vpop.f32.mrf.mxu1 }
  0xf0   : > { %v980_v50 = vpop.f32.mrf.mxu0 }
  0xf1   : > { %v981_v51 = vadd.f32 %v980_v50, %v979_v48  ;;  %v1020_v52 = vpop.f32.mrf.mxu1 }
  0xf2   : > { %v982_v54 = vpop.f32.mrf.mxu0  ;;  %v1021_v61 = vadd.f32 %v1020_v52, %v1019_v49 }
  0xf3   : > { %v1022_v55 = vpop.f32.mrf.mxu1  ;;  %v623_v57 = vadd.f32 %v981_v51, %v1311_v53 }
  0xf4   : > { %v983_v56 = vpop.f32.mrf.mxu0 }
  0xf5   : > { %v984_v58 = vadd.f32 %v983_v56, %v982_v54  ;;  %v1023_v59 = vpop.f32.mrf.mxu1  ;;  %v688_v2 = vadd.f32 %v1021_v61, %v623_v57 }
  0xf6   : > { %v985_v60 = vpop.f32.mrf.mxu0  ;;  %v1024_v63 = vadd.f32 %v1023_v59, %v1022_v55 }
  0xf7   : > { %v626_v62 = vadd.f32 %v984_v58, %v1311_v53  ;;  %v1025_v0 = vpop.f32.mrf.mxu1 }
  0xf8   : > { %v986_v1 = vpop.f32.mrf.mxu0 }
  0xf9   : > { %v691_v3 = vadd.f32 %v1024_v63, %v626_v62  ;;  %v987_v4 = vadd.f32 %v986_v1, %v985_v60  ;;  %v1026_v5 = vpop.f32.mrf.mxu1 }
  0xfa   : > { %v988_v6 = vpop.f32.mrf.mxu0  ;;  %v1027_v14 = vadd.f32 %v1026_v5, %v1025_v0 }
  0xfb   : > { %v943_v7 = vpack.c.bf16 %v691_v3, %v688_v2  ;;  %v1028_v8 = vpop.f32.mrf.mxu1  ;;  %v631_v10 = vadd.f32 %v987_v4, %v1311_v53 }
  0xfc   : > { %v989_v9 = vpop.f32.mrf.mxu0 }
  0xfd   : > { %944 = vst [vmem:[%s1319_s20] sm:$0xff] %v943_v7   ;;  %v990_v11 = vadd.f32 %v989_v9, %v988_v6  ;;  %v1029_v12 = vpop.f32.mrf.mxu1  ;;  %v696_v19 = vadd.f32 %v1027_v14, %v631_v10 }
  0xfe   : > { %v991_v13 = vpop.f32.mrf.mxu0  ;;  %v1030_v16 = vadd.f32 %v1029_v12, %v1028_v8 }
  0xff   : > { %v634_v15 = vadd.f32 %v990_v11, %v1311_v53  ;;  %v1031_v17 = vpop.f32.mrf.mxu1 }
 0x100   : > { %v992_v18 = vpop.f32.mrf.mxu0 }
 0x101   : > { %v699_v20 = vadd.f32 %v1030_v16, %v634_v15  ;;  %v993_v21 = vadd.f32 %v992_v18, %v991_v13  ;;  %v1032_v22 = vpop.f32.mrf.mxu1 }
 0x102   : > { %v994_v23 = vpop.f32.mrf.mxu0  ;;  %v1033_v31 = vadd.f32 %v1032_v22, %v1031_v17 }
 0x103   : > { %v948_v24 = vpack.c.bf16 %v699_v20, %v696_v19  ;;  %v1034_v25 = vpop.f32.mrf.mxu1  ;;  %v639_v27 = vadd.f32 %v993_v21, %v1311_v53 }
 0x104   : > { %v995_v26 = vpop.f32.mrf.mxu0 }
 0x105   : > { %960 = vst [vmem:[%s1319_s20 + $0x8] sm:$0xff] %v948_v24   ;;  %v996_v28 = vadd.f32 %v995_v26, %v994_v23  ;;  %v1035_v29 = vpop.f32.mrf.mxu1  ;;  %v704_v36 = vadd.f32 %v1033_v31, %v639_v27 }
 0x106   : > { %v997_v30 = vpop.f32.mrf.mxu0  ;;  %v1036_v33 = vadd.f32 %v1035_v29, %v1034_v25 }
 0x107   : > { %v642_v32 = vadd.f32 %v996_v28, %v1311_v53  ;;  %v1037_v34 = vpop.f32.mrf.mxu1 }
 0x108   : > { %v998_v35 = vpop.f32.mrf.mxu0 }
 0x109   : > { %v707_v37 = vadd.f32 %v1036_v33, %v642_v32  ;;  %v999_v38 = vadd.f32 %v998_v35, %v997_v30  ;;  %v1038_v39 = vpop.f32.mrf.mxu1 }
 0x10a   : > { %v1000_v40 = vpop.f32.mrf.mxu0  ;;  %v1039_v47 = vadd.f32 %v1038_v39, %v1037_v34 }
 0x10b   : > { %v953_v41 = vpack.c.bf16 %v707_v37, %v704_v36  ;;  %v1040_v42 = vpop.f32.mrf.mxu1  ;;  %v647_v44 = vadd.f32 %v999_v38, %v1311_v53 }
 0x10c   : > { %v1001_v43 = vpop.f32.mrf.mxu0 }
 0x10d   : > { %961 = vst [vmem:[%s1319_s20 + $0x10] sm:$0xff] %v953_v41   ;;  %v1002_v45 = vadd.f32 %v1001_v43, %v1000_v40  ;;  %v1041_v46 = vpop.f32.mrf.mxu1  ;;  %v712_v50 = vadd.f32 %v1039_v47, %v647_v44 }
 0x10e   : > { %v1042_v49 = vadd.f32 %v1041_v46, %v1040_v42 }
 0x10f   : > { %v650_v48 = vadd.f32 %v1002_v45, %v1311_v53 }
 0x111   : > { %v715_v51 = vadd.f32 %v1042_v49, %v650_v48 }
 0x113   : > { %v958_v52 = vpack.c.bf16 %v715_v51, %v712_v50 }
 0x115   : > { %962 = vst [vmem:[%s1319_s20 + $0x18] sm:$0xff] %v958_v52  }
 0x116 PF: > { %s13_s14 = sadd.s32 1, %s1145_s14   ;;  %s1344_s12 = smov %s1141_s13 }
 0x117   : > { %p10_p5 = scmp.ge.s32.totalorder %s13_s14, 4   ;;  %s1345_s13 = smov %s1347_s15 }
 0x119   :  { %12 = sbr.rel (!%p10_p5) target bundleno = 2 (0x2), region = 68 }

// kernel: generator_forward.16
= control target key start
LH: loop header
LB: loop body
LE: loop exit
PB: predicated region body
PF: predicated region fallthrough
CT: control target
= control target key end

     0   :  { %s401_s16 = smov 0   ;;  %s425_s0 = inlined_call_operand.<no memory space> [shape: f32[1], index: 0, kind: input, shape index: {}]   ;;  %s426_s1 = inlined_call_operand.<no memory space> [shape: f32[1], index: 1, kind: input, shape index: {}]   ;;  %s427_s2 = inlined_call_operand.vmem [shape: bf16[2,32,128], index: 2, kind: input, shape index: {}]   ;;  %s428_s3 = inlined_call_operand.vmem [shape: bf16[2,32,128], index: 3, kind: output, shape index: {}]  }
   0x1   :  { %8 = sst [smem:[#allocation2]] %s425_s0 }
   0x2   :  { %9 = sst [smem:[#allocation3]] %s426_s1 }
   0x3 LB: > { %s310_s17 = sadd.s32 4294967295, %s373_s16   ;;  %p314_p0 = scmp.ge.s32.totalorder %s373_s16, 1  ;;  %s373_s16 = sphi %s401_s16, %s15_s16  }
   0x4   : > { %p139_p1 = scmp.lt.s32.totalorder %s373_s16, 3 }
   0x6   : > { %p140_p2 = pnand %p314_p0, %p139_p1 }
   0x7   : > { %p163_p3 = scmp.lt.s32.totalorder (!%p140_p2), %s310_s17, 1  ;;  %s222_s27 = sld [smem:[#allocation2]] (!%p140_p2) }
   0x8   : > { %143 = sbr.rel (%p140_p2) target bundleno = 310 (0x136), region = 32  ;;  %s229_s28 = sld [smem:[#allocation3]] (!%p140_p2) }
   0xd   : > { %s430_s17 = smov (!%p163_p3, %s310_s17), 1 }
   0xe   : > { %s325_s0 = sshll.u32 %s430_s17, 4  ;;  %v230_v38 = vstv %s229_s28 }
   0xf   : > { %s167_s19 = scalar_lea.vmem %s427_s2, %s325_s0  ;;  %s172_s6 = scalar_lea.vmem %s428_s3, %s325_s0 }
  0x10   : > { %v332_v0 = vld [vmem:[%s167_s19] sm:$0xff]   ;;  %v349_v1 = vld [vmem:[%s167_s19 + $0x8] sm:$0xff]  }
  0x11   : > { %v333_v2 = vunpack.c.l.bf16 %v332_v0  ;;  %v334_v3 = vunpack.c.h.bf16 %v332_v0  ;;  %v337_v4 = vunpack.c.l.bf16 %v349_v1  ;;  %v338_v5 = vunpack.c.h.bf16 %v349_v1 }
  0x13   : > { %v181_v6 = vadd.f32 %v334_v3, %v333_v2  ;;  %v193_v7 = vmul.f32 %v333_v2, %v333_v2  ;;  %v194_v8 = vmul.f32 %v334_v3, %v334_v3  ;;  %v195_v9 = vmul.f32 %v337_v4, %v337_v4 }
  0x14   : > { %v196_v11 = vmul.f32 %v338_v5, %v338_v5 }
  0x15   : > { %v182_v10 = vadd.f32 %v337_v4, %v181_v6  ;;  %v197_v12 = vadd.f32 %v194_v8, %v193_v7 }
  0x17   : > { %v183_v13 = vadd.f32 %v338_v5, %v182_v10  ;;  %v198_v14 = vadd.f32 %v197_v12, %v195_v9 }
  0x19   : > { %184 = vadd.xlane.f32.xlu0 %v183_v13  ;;  %v199_v15 = vadd.f32 %v198_v14, %v196_v11 }
  0x1d   : > { %200 = vadd.xlane.f32.xlu0 %v199_v15 }
  0xa2   : > { %v185_v16 = vpop.xlane.xlu0 %184 }
  0xa3   : > { %v186_v17 = vrot.slane %v185_v16, 4 }
  0xa5   : > { %v187_v18 = vadd.f32 %v186_v17, %v185_v16 }
  0xa6   : > { %v201_v19 = vpop.xlane.xlu0 %200 }
  0xa7   : > { %v188_v20 = vrot.slane %v187_v18, 2  ;;  %v202_v21 = vrot.slane %v201_v19, 4 }
  0xa9   : > { %v203_v22 = vadd.f32 %v202_v21, %v201_v19  ;;  %v189_v23 = vadd.f32 %v188_v20, %v187_v18 }
  0xab   : > { %v204_v24 = vrot.slane %v203_v22, 2  ;;  %v190_v25 = vrot.slane %v189_v23, 1 }
  0xad   : > { %v205_v26 = vadd.f32 %v204_v24, %v203_v22  ;;  %v191_v27 = vadd.f32 %v190_v25, %v189_v23 }
  0xaf   : > { %351 = vpush %v191_v27  ;;  %v206_v28 = vrot.slane %v205_v26, 1 }
  0xb1   : > { %v207_v29 = vadd.f32 %v206_v28, %v205_v26 }
  0xb3   : > { %353 = vpush %v207_v29 }
  0xe0   : > { %s352_s20 = spop %351 }
  0xe1   : > { %s209_s21 = smul.f32 0.00024414063, %s352_s20 }
  0xe3   : > { %s211_s22 = smul.f32 %s209_s21, %s209_s21  ;;  %v217_v32 = vstv %s209_s21 }
  0xe4   : > { %s354_s23 = spop %353  ;;  %v218_v33 = vsub.f32 %v333_v2, %v217_v32  ;;  %v219_v34 = vsub.f32 %v334_v3, %v217_v32  ;;  %v220_v35 = vsub.f32 %v337_v4, %v217_v32  ;;  %v221_v36 = vsub.f32 %v338_v5, %v217_v32 }
  0xe5   : > { %s210_s24 = smul.f32 0.00024414063, %s354_s23 }
  0xe7   : > { %s212_s25 = ssub.f32 %s210_s24, %s211_s22 }
  0xe9   : > { %s213_s26 = sadd.f32 0.001, %s212_s25 }
  0xeb   : > { %v214_v30 = vstv %s213_s26 }
  0xec   : > { %365 = vrsqrt.f32 %v214_v30 }
  0xf9   : > { %v366_v31 = vpop.eup %365 }
  0xfa   : > { %355 = vpush %v366_v31 }
 0x12b   : > { %s356_s29 = spop %355 }
 0x12c   : > { %s223_s30 = smul.f32 %s356_s29, %s222_s27 }
 0x12e   : > { %v224_v37 = vstv %s223_s30 }
 0x12f   : > { %v225_v39 = vmul.f32 %v224_v37, %v218_v33  ;;  %v226_v40 = vmul.f32 %v224_v37, %v219_v34  ;;  %v227_v41 = vmul.f32 %v224_v37, %v220_v35  ;;  %v228_v42 = vmul.f32 %v224_v37, %v221_v36 }
 0x131   : > { %v231_v43 = vadd.f32 %v230_v38, %v225_v39  ;;  %v232_v44 = vadd.f32 %v230_v38, %v226_v40  ;;  %v233_v45 = vadd.f32 %v230_v38, %v227_v41  ;;  %v234_v46 = vadd.f32 %v230_v38, %v228_v42 }
 0x133   : > { %v342_v47 = vpack.c.bf16 %v232_v44, %v231_v43  ;;  %v347_v48 = vpack.c.bf16 %v234_v46, %v233_v45 }
 0x135   : > { %343 = vst [vmem:[%s172_s6] sm:$0xff] %v342_v47   ;;  %350 = vst [vmem:[%s172_s6 + $0x8] sm:$0xff] %v347_v48  }
 0x136 PF: > { %s15_s16 = sadd.s32 1, %s373_s16  }
 0x137   : > { %p12_p4 = scmp.ge.s32.totalorder %s15_s16, 4  }
 0x139   :  { %14 = sbr.rel (!%p12_p4) target bundleno = 3 (0x3), region = 62 }

// kernel: generator_forward.17
= control target key start
LH: loop header
LB: loop body
LE: loop exit
PB: predicated region body
PF: predicated region fallthrough
CT: control target
= control target key end

     0   :  { %s1271_s12 = smov 0   ;;  %s1273_s13 = smov 0   ;;  %s1464_s0 = inlined_call_operand.vmem [shape: bf16[512,256], index: 0, kind: input, shape index: {}]   ;;  %s1465_s1 = inlined_call_operand.vmem [shape: bf16[256,128], index: 1, kind: input, shape index: {}]   ;;  %s1466_s2 = inlined_call_operand.vmem [shape: f32[1,128], index: 2, kind: input, shape index: {}]   ;;  %s1467_s3 = inlined_call_operand.vmem [shape: f32[512,128], index: 3, kind: output, shape index: {}]  }
   0x1   :  { %s1275_s14 = smov 0  }
   0x2 LB: > { %s25_s15 = sadd.s32 1, %s1245_s13  ;;  %p889_p0 = scmp.ge.s32.totalorder %s1249_s14, 1  ;;  %s1249_s14 = sphi %s1275_s14, %s13_s14   ;;  %s1245_s13 = sphi %s1273_s13, %s1469_s13   ;;  %s1241_s12 = sphi %s1271_s12, %s1468_s12  }
   0x3   : > { %p27_p1 = scmp.ge.s32.totalorder %s25_s15, 2  ;;  %p170_p2 = scmp.lt.s32.totalorder %s1249_s14, 3 }
   0x5   : > { %s1471_s15 = smov (%p27_p1, %s25_s15), 0  ;;  %p171_p3 = pnand %p889_p0, %p170_p2 }
   0x6   : > { %s890_s18 = sshll.u32 (!%p171_p3), %s1241_s12, 5 }
   0x7   : > { %174 = sbr.rel (%p171_p3) target bundleno = 320 (0x140), region = 32  ;;  %p206_p4 = scmp.lt.s32.totalorder (!%p171_p3), %s890_s18, 63 }
   0xc   : > { %v1099_v0 = vld [vmem:[%s1465_s1 + $0x78] sm:$0xff]   ;;  %v1101_v2 = vld [vmem:[%s1465_s1 + $0x70] sm:$0xff]   ;;  %v1103_v4 = vld [vmem:[%s1465_s1 + $0x68] sm:$0xff]   ;;  %s1473_s18 = smov (!%p206_p4, %s890_s18), 63 }
   0xd   : > { %v1100_v1 = vld [vmem:[%s1465_s1 + $0x38] sm:$0xff]   ;;  %947 = vmatprep.subr.bf16.mxu0 %v1099_v0  ;;  %1059 = vmatprep.subr.bf16.mxu1 %v1099_v0  ;;  %v1102_v3 = vld [vmem:[%s1465_s1 + $0x30] sm:$0xff]   ;;  %v1104_v5 = vld [vmem:[%s1465_s1 + $0x28] sm:$0xff]   ;;  %s946_s6 = sshll.u32 %s1473_s18, 3 }
   0xe   : > { %948 = vmatpush3.bf16.msra.mxu0 %v1100_v1  ;;  %1067 = vmatpush3.bf16.msra.mxu1 %v1100_v1  ;;  %v1105_v6 = vld [vmem:[%s1465_s1 + $0x60] sm:$0xff]   ;;  %v1107_v8 = vld [vmem:[%s1465_s1 + $0x58] sm:$0xff]   ;;  %s1324_s11 = scalar_lea.vmem %s1464_s0, %s946_s6  ;;  %v1109_v10 = vld [vmem:[%s1465_s1 + $0x50] sm:$0xff]   ;;  %s1397_s8 = scalar_lea.vmem %s1467_s3, %s946_s6 }
   0xf   : > { %949 = vmatprep.subr.bf16.mxu0 %v1101_v2  ;;  %1060 = vmatprep.subr.bf16.mxu1 %v1101_v2  ;;  %v1106_v7 = vld [vmem:[%s1465_s1 + $0x20] sm:$0xff]   ;;  %v1108_v9 = vld [vmem:[%s1465_s1 + $0x18] sm:$0xff]   ;;  %v1110_v13 = vld [vmem:[%s1465_s1 + $0x10] sm:$0xff]  }
  0x10   : > { %v1117_v11 = vld [vmem:[%s1324_s11 + $0x4] ss:$8 sps:$4 sm:$0xff]   ;;  %v1115_v18 = vld [vmem:[%s1324_s11] ss:$8 sps:$4 sm:$0xff]   ;;  %v1121_v20 = vld [vmem:[%s1324_s11 + $0x14] ss:$8 sps:$4 sm:$0xff]  }
  0x11   : > { %v1120_v12 = vld [vmem:[%s1324_s11 + $0x84] ss:$8 sps:$4 sm:$0xff]   ;;  %588 = vmatprep.mubr.bf16.mxu0 %v1117_v11  ;;  %v1118_v19 = vld [vmem:[%s1324_s11 + $0x80] ss:$8 sps:$4 sm:$0xff]   ;;  %v1123_v21 = vld [vmem:[%s1324_s11 + $0x94] ss:$8 sps:$4 sm:$0xff]  }
  0x12   : > { %950 = vmatpush3.bf16.msra.mxu0 %v1102_v3  ;;  %1068 = vmatpush3.bf16.msra.mxu1 %v1102_v3  ;;  %v1111_v14 = vld [vmem:[%s1465_s1 + $0x48] sm:$0xff]   ;;  %v1113_v16 = vld [vmem:[%s1465_s1 + $0x40] sm:$0xff]   ;;  %v1125_v22 = vld [vmem:[%s1324_s11 + $0x10] ss:$8 sps:$4 sm:$0xff]  }
  0x13   : > { %951 = vmatprep.subr.bf16.mxu0 %v1103_v4  ;;  %1061 = vmatprep.subr.bf16.mxu1 %v1103_v4  ;;  %v1112_v15 = vld [vmem:[%s1465_s1 + $0x8] sm:$0xff]   ;;  %v1114_v17 = vld [vmem:[%s1465_s1] sm:$0xff]   ;;  %v1126_v23 = vld [vmem:[%s1324_s11 + $0x90] ss:$8 sps:$4 sm:$0xff]  }
  0x14   : > { %652 = vmatprep.mubr.bf16.mxu1 %v1120_v12  ;;  %v1127_v24 = vld [vmem:[%s1324_s11 + $0x24] ss:$8 sps:$4 sm:$0xff]   ;;  %v1131_v26 = vld [vmem:[%s1324_s11 + $0x20] ss:$8 sps:$4 sm:$0xff]   ;;  %v1133_v28 = vld [vmem:[%s1324_s11 + $0x34] ss:$8 sps:$4 sm:$0xff]  }
  0x15   : > { %v1129_v25 = vld [vmem:[%s1324_s11 + $0xa4] ss:$8 sps:$4 sm:$0xff]   ;;  %v1132_v27 = vld [vmem:[%s1324_s11 + $0xa0] ss:$8 sps:$4 sm:$0xff]   ;;  %v1135_v29 = vld [vmem:[%s1324_s11 + $0xb4] ss:$8 sps:$4 sm:$0xff]  }
  0x16   : > { %952 = vmatpush3.bf16.msra.mxu0 %v1104_v5  ;;  %1069 = vmatpush3.bf16.msra.mxu1 %v1104_v5  ;;  %v1137_v30 = vld [vmem:[%s1324_s11 + $0x30] ss:$8 sps:$4 sm:$0xff]   ;;  %v1139_v32 = vld [vmem:[%s1324_s11 + $0x44] ss:$8 sps:$4 sm:$0xff]   ;;  %v1143_v34 = vld [vmem:[%s1324_s11 + $0x40] ss:$8 sps:$4 sm:$0xff]  }
  0x17   : > { %953 = vmatprep.subr.bf16.mxu0 %v1105_v6  ;;  %1062 = vmatprep.subr.bf16.mxu1 %v1105_v6  ;;  %v1138_v31 = vld [vmem:[%s1324_s11 + $0xb0] ss:$8 sps:$4 sm:$0xff]   ;;  %v1141_v33 = vld [vmem:[%s1324_s11 + $0xc4] ss:$8 sps:$4 sm:$0xff]   ;;  %v1144_v35 = vld [vmem:[%s1324_s11 + $0xc0] ss:$8 sps:$4 sm:$0xff]  }
  0x18   : > { %v1145_v36 = vld [vmem:[%s1324_s11 + $0x54] ss:$8 sps:$4 sm:$0xff]   ;;  %v1149_v38 = vld [vmem:[%s1324_s11 + $0x50] ss:$8 sps:$4 sm:$0xff]   ;;  %v1151_v40 = vld [vmem:[%s1324_s11 + $0x64] ss:$8 sps:$4 sm:$0xff]  }
  0x19   : > { %v1147_v37 = vld [vmem:[%s1324_s11 + $0xd4] ss:$8 sps:$4 sm:$0xff]   ;;  %v1150_v39 = vld [vmem:[%s1324_s11 + $0xd0] ss:$8 sps:$4 sm:$0xff]   ;;  %v1153_v41 = vld [vmem:[%s1324_s11 + $0xe4] ss:$8 sps:$4 sm:$0xff]  }
  0x1a   : > { %954 = vmatpush3.bf16.msra.mxu0 %v1106_v7  ;;  %1070 = vmatpush3.bf16.msra.mxu1 %v1106_v7  ;;  %v1155_v42 = vld [vmem:[%s1324_s11 + $0x60] ss:$8 sps:$4 sm:$0xff]   ;;  %v1157_v44 = vld [vmem:[%s1324_s11 + $0x74] ss:$8 sps:$4 sm:$0xff]   ;;  %v1161_v46 = vld [vmem:[%s1324_s11 + $0x70] ss:$8 sps:$4 sm:$0xff]  }
  0x1b   : > { %955 = vmatprep.subr.bf16.mxu0 %v1107_v8  ;;  %1063 = vmatprep.subr.bf16.mxu1 %v1107_v8  ;;  %v1156_v43 = vld [vmem:[%s1324_s11 + $0xe0] ss:$8 sps:$4 sm:$0xff]   ;;  %v1159_v45 = vld [vmem:[%s1324_s11 + $0xf4] ss:$8 sps:$4 sm:$0xff]   ;;  %v1162_v47 = vld [vmem:[%s1324_s11 + $0xf0] ss:$8 sps:$4 sm:$0xff]  }
  0x1c   : > { %v1382_v50 = vld [vmem:[%s1466_s2] ss:$0 sm:$0xff] }
  0x1e   : > { %956 = vmatpush3.bf16.msra.mxu0 %v1108_v9  ;;  %1071 = vmatpush3.bf16.msra.mxu1 %v1108_v9 }
  0x1f   : > { %957 = vmatprep.subr.bf16.mxu0 %v1109_v10  ;;  %1064 = vmatprep.subr.bf16.mxu1 %v1109_v10 }
  0x22   : > { %958 = vmatpush3.bf16.msra.mxu0 %v1110_v13  ;;  %1072 = vmatpush3.bf16.msra.mxu1 %v1110_v13 }
  0x23   : > { %959 = vmatprep.subr.bf16.mxu0 %v1111_v14  ;;  %1065 = vmatprep.subr.bf16.mxu1 %v1111_v14 }
  0x26   : > { %960 = vmatpush3.bf16.msra.mxu0 %v1112_v15  ;;  %1073 = vmatpush3.bf16.msra.mxu1 %v1112_v15 }
  0x27   : > { %961 = vmatprep.subr.bf16.mxu0 %v1113_v16  ;;  %1066 = vmatprep.subr.bf16.mxu1 %v1113_v16 }
  0x2a   : > { %962 = vmatpush3.bf16.msra.mxu0 %v1114_v17  ;;  %1074 = vmatpush3.bf16.msra.mxu1 %v1114_v17 }
  0x2d   : > { %589 = vmatmul.mubr.bf16.vlgmr.msra.gmra.mxu0 %v1115_v18  ;;  %653 = vmatmul.mubr.bf16.vlgmr.msra.gmra.mxu1 %v1118_v19 }
  0x2e   : > { %596 = vmatprep.mubr.bf16.mxu0 %v1121_v20  ;;  %660 = vmatprep.mubr.bf16.mxu1 %v1123_v21 }
  0x35   : > { %597 = vmatmul.mubr.bf16.gmra.mxu0 %v1125_v22  ;;  %661 = vmatmul.mubr.bf16.gmra.mxu1 %v1126_v23 }
  0x36   : > { %604 = vmatprep.mubr.bf16.mxu0 %v1127_v24  ;;  %668 = vmatprep.mubr.bf16.mxu1 %v1129_v25 }
  0x3d   : > { %605 = vmatmul.mubr.bf16.gmra.mxu0 %v1131_v26  ;;  %669 = vmatmul.mubr.bf16.gmra.mxu1 %v1132_v27 }
  0x3e   : > { %612 = vmatprep.mubr.bf16.mxu0 %v1133_v28  ;;  %676 = vmatprep.mubr.bf16.mxu1 %v1135_v29 }
  0x45   : > { %613 = vmatmul.mubr.bf16.gmra.mxu0 %v1137_v30  ;;  %677 = vmatmul.mubr.bf16.gmra.mxu1 %v1138_v31 }
  0x46   : > { %620 = vmatprep.mubr.bf16.mxu0 %v1139_v32  ;;  %684 = vmatprep.mubr.bf16.mxu1 %v1141_v33 }
  0x4d   : > { %621 = vmatmul.mubr.bf16.gmra.mxu0 %v1143_v34  ;;  %685 = vmatmul.mubr.bf16.gmra.mxu1 %v1144_v35 }
  0x4e   : > { %628 = vmatprep.mubr.bf16.mxu0 %v1145_v36  ;;  %692 = vmatprep.mubr.bf16.mxu1 %v1147_v37 }
  0x55   : > { %629 = vmatmul.mubr.bf16.gmra.mxu0 %v1149_v38  ;;  %693 = vmatmul.mubr.bf16.gmra.mxu1 %v1150_v39 }
  0x56   : > { %636 = vmatprep.mubr.bf16.mxu0 %v1151_v40  ;;  %700 = vmatprep.mubr.bf16.mxu1 %v1153_v41 }
  0x5d   : > { %637 = vmatmul.mubr.bf16.gmra.mxu0 %v1155_v42  ;;  %701 = vmatmul.mubr.bf16.gmra.mxu1 %v1156_v43 }
  0x5e   : > { %644 = vmatprep.mubr.bf16.mxu0 %v1157_v44  ;;  %708 = vmatprep.mubr.bf16.mxu1 %v1159_v45 }
  0x65   : > { %645 = vmatmul.mubr.bf16.gmra.mxu0 %v1161_v46  ;;  %709 = vmatmul.mubr.bf16.gmra.mxu1 %v1162_v47 }
  0xed   : > { %v963_v48 = vpop.f32.mrf.mxu0  ;;  %v1011_v49 = vpop.f32.mrf.mxu1 }
  0xef   : > { %v964_v51 = vpop.f32.mrf.mxu0  ;;  %v1012_v52 = vpop.f32.mrf.mxu1 }
  0xf0   : > { %v965_v53 = vadd.f32 %v964_v51, %v963_v48  ;;  %v1013_v54 = vadd.f32 %v1012_v52, %v1011_v49 }
  0xf1   : > { %v966_v55 = vpop.f32.mrf.mxu0  ;;  %v1014_v56 = vpop.f32.mrf.mxu1 }
  0xf2   : > { %v591_v57 = vadd.f32 %v965_v53, %v1382_v50  ;;  %v655_v58 = vadd.f32 %v1013_v54, %v1382_v50 }
  0xf3   : > { %v967_v59 = vpop.f32.mrf.mxu0  ;;  %v1015_v60 = vpop.f32.mrf.mxu1 }
  0xf4   : > { %1163 = vtanh.f32 %v591_v57  ;;  %v968_v61 = vadd.f32 %v967_v59, %v966_v55  ;;  %v1016_v62 = vadd.f32 %v1015_v60, %v1014_v56 }
  0xf5   : > { %1165 = vtanh.f32 %v655_v58  ;;  %v969_v63 = vpop.f32.mrf.mxu0  ;;  %v1017_v0 = vpop.f32.mrf.mxu1 }
  0xf6   : > { %v594_v1 = vadd.f32 %v968_v61, %v1382_v50  ;;  %v658_v2 = vadd.f32 %v1016_v62, %v1382_v50 }
  0xf7   : > { %v970_v3 = vpop.f32.mrf.mxu0  ;;  %v1018_v4 = vpop.f32.mrf.mxu1 }
  0xf8   : > { %1167 = vtanh.f32 %v594_v1  ;;  %v971_v5 = vadd.f32 %v970_v3, %v969_v63  ;;  %v1019_v6 = vadd.f32 %v1018_v4, %v1017_v0 }
  0xf9   : > { %1169 = vtanh.f32 %v658_v2  ;;  %v972_v7 = vpop.f32.mrf.mxu0  ;;  %v1020_v8 = vpop.f32.mrf.mxu1 }
  0xfa   : > { %v599_v9 = vadd.f32 %v971_v5, %v1382_v50  ;;  %v663_v10 = vadd.f32 %v1019_v6, %v1382_v50 }
  0xfb   : > { %v973_v11 = vpop.f32.mrf.mxu0  ;;  %v1021_v12 = vpop.f32.mrf.mxu1 }
  0xfc   : > { %1171 = vtanh.f32 %v599_v9  ;;  %v974_v13 = vadd.f32 %v973_v11, %v972_v7  ;;  %v1022_v14 = vadd.f32 %v1021_v12, %v1020_v8 }
  0xfd   : > { %1173 = vtanh.f32 %v663_v10  ;;  %v975_v15 = vpop.f32.mrf.mxu0  ;;  %v1023_v16 = vpop.f32.mrf.mxu1 }
  0xfe   : > { %v602_v17 = vadd.f32 %v974_v13, %v1382_v50  ;;  %v666_v18 = vadd.f32 %v1022_v14, %v1382_v50 }
  0xff   : > { %v976_v19 = vpop.f32.mrf.mxu0  ;;  %v1024_v20 = vpop.f32.mrf.mxu1 }
 0x100   : > { %1175 = vtanh.f32 %v602_v17  ;;  %v977_v21 = vadd.f32 %v976_v19, %v975_v15  ;;  %v1025_v22 = vadd.f32 %v1024_v20, %v1023_v16 }
 0x101   : > { %v1164_v23 = vpop.eup %1163  ;;  %1177 = vtanh.f32 %v666_v18  ;;  %v978_v24 = vpop.f32.mrf.mxu0 }
 0x102   : > { %v1026_v25 = vpop.f32.mrf.mxu1  ;;  %v1166_v26 = vpop.eup %1165  ;;  %749 = vst [vmem:[%s1397_s8] sm:$0xff] %v1164_v23  ;;  %v607_v27 = vadd.f32 %v977_v21, %v1382_v50  ;;  %v671_v28 = vadd.f32 %v1025_v22, %v1382_v50 }
 0x103   : > { %765 = vst [vmem:[%s1397_s8 + $0x80] sm:$0xff] %v1166_v26  ;;  %v979_v29 = vpop.f32.mrf.mxu0 }
 0x104   : > { %v1027_v30 = vpop.f32.mrf.mxu1  ;;  %1179 = vtanh.f32 %v607_v27  ;;  %v980_v31 = vadd.f32 %v979_v29, %v978_v24 }
 0x105   : > { %v1028_v32 = vadd.f32 %v1027_v30, %v1026_v25  ;;  %v1168_v33 = vpop.eup %1167  ;;  %1181 = vtanh.f32 %v671_v28  ;;  %v981_v34 = vpop.f32.mrf.mxu0 }
 0x106   : > { %v1029_v35 = vpop.f32.mrf.mxu1  ;;  %v1170_v36 = vpop.eup %1169  ;;  %750 = vst [vmem:[%s1397_s8 + $0x8] sm:$0xff] %v1168_v33  ;;  %v610_v37 = vadd.f32 %v980_v31, %v1382_v50 }
 0x107   : > { %v674_v38 = vadd.f32 %v1028_v32, %v1382_v50  ;;  %766 = vst [vmem:[%s1397_s8 + $0x88] sm:$0xff] %v1170_v36  ;;  %v982_v39 = vpop.f32.mrf.mxu0 }
 0x108   : > { %v1030_v40 = vpop.f32.mrf.mxu1  ;;  %1183 = vtanh.f32 %v610_v37  ;;  %v983_v41 = vadd.f32 %v982_v39, %v981_v34 }
 0x109   : > { %v1031_v42 = vadd.f32 %v1030_v40, %v1029_v35  ;;  %v1172_v43 = vpop.eup %1171  ;;  %1185 = vtanh.f32 %v674_v38  ;;  %v984_v44 = vpop.f32.mrf.mxu0 }
 0x10a   : > { %v1032_v45 = vpop.f32.mrf.mxu1  ;;  %v1174_v46 = vpop.eup %1173  ;;  %751 = vst [vmem:[%s1397_s8 + $0x10] sm:$0xff] %v1172_v43  ;;  %v615_v47 = vadd.f32 %v983_v41, %v1382_v50 }
 0x10b   : > { %v679_v48 = vadd.f32 %v1031_v42, %v1382_v50  ;;  %767 = vst [vmem:[%s1397_s8 + $0x90] sm:$0xff] %v1174_v46  ;;  %v985_v49 = vpop.f32.mrf.mxu0 }
 0x10c   : > { %v1033_v51 = vpop.f32.mrf.mxu1  ;;  %1187 = vtanh.f32 %v615_v47  ;;  %v986_v52 = vadd.f32 %v985_v49, %v984_v44 }
 0x10d   : > { %v1034_v53 = vadd.f32 %v1033_v51, %v1032_v45  ;;  %v1176_v54 = vpop.eup %1175  ;;  %1189 = vtanh.f32 %v679_v48  ;;  %v987_v55 = vpop.f32.mrf.mxu0 }
 0x10e   : > { %v1035_v56 = vpop.f32.mrf.mxu1  ;;  %v1178_v57 = vpop.eup %1177  ;;  %752 = vst [vmem:[%s1397_s8 + $0x18] sm:$0xff] %v1176_v54  ;;  %v618_v58 = vadd.f32 %v986_v52, %v1382_v50 }
 0x10f   : > { %v682_v59 = vadd.f32 %v1034_v53, %v1382_v50  ;;  %768 = vst [vmem:[%s1397_s8 + $0x98] sm:$0xff] %v1178_v57  ;;  %v988_v60 = vpop.f32.mrf.mxu0 }
 0x110   : > { %v1036_v61 = vpop.f32.mrf.mxu1  ;;  %1191 = vtanh.f32 %v618_v58  ;;  %v989_v62 = vadd.f32 %v988_v60, %v987_v55 }
 0x111   : > { %v1037_v63 = vadd.f32 %v1036_v61, %v1035_v56  ;;  %v1180_v0 = vpop.eup %1179  ;;  %1193 = vtanh.f32 %v682_v59  ;;  %v990_v1 = vpop.f32.mrf.mxu0 }
 0x112   : > { %v1038_v2 = vpop.f32.mrf.mxu1  ;;  %v1182_v3 = vpop.eup %1181  ;;  %753 = vst [vmem:[%s1397_s8 + $0x20] sm:$0xff] %v1180_v0  ;;  %v623_v4 = vadd.f32 %v989_v62, %v1382_v50 }
 0x113   : > { %v687_v5 = vadd.f32 %v1037_v63, %v1382_v50  ;;  %769 = vst [vmem:[%s1397_s8 + $0xa0] sm:$0xff] %v1182_v3  ;;  %v991_v6 = vpop.f32.mrf.mxu0 }
 0x114   : > { %v1039_v7 = vpop.f32.mrf.mxu1  ;;  %1195 = vtanh.f32 %v623_v4  ;;  %v992_v8 = vadd.f32 %v991_v6, %v990_v1 }
 0x115   : > { %v1040_v9 = vadd.f32 %v1039_v7, %v1038_v2  ;;  %v1184_v10 = vpop.eup %1183  ;;  %1197 = vtanh.f32 %v687_v5  ;;  %v993_v11 = vpop.f32.mrf.mxu0 }
 0x116   : > { %v1041_v12 = vpop.f32.mrf.mxu1  ;;  %v1186_v13 = vpop.eup %1185  ;;  %754 = vst [vmem:[%s1397_s8 + $0x28] sm:$0xff] %v1184_v10  ;;  %v626_v14 = vadd.f32 %v992_v8, %v1382_v50 }
 0x117   : > { %v690_v15 = vadd.f32 %v1040_v9, %v1382_v50  ;;  %770 = vst [vmem:[%s1397_s8 + $0xa8] sm:$0xff] %v1186_v13  ;;  %v994_v16 = vpop.f32.mrf.mxu0 }
 0x118   : > { %v1042_v17 = vpop.f32.mrf.mxu1  ;;  %1199 = vtanh.f32 %v626_v14  ;;  %v995_v18 = vadd.f32 %v994_v16, %v993_v11 }
 0x119   : > { %v1043_v19 = vadd.f32 %v1042_v17, %v1041_v12  ;;  %v1188_v20 = vpop.eup %1187  ;;  %1201 = vtanh.f32 %v690_v15  ;;  %v996_v21 = vpop.f32.mrf.mxu0 }
 0x11a   : > { %v1044_v22 = vpop.f32.mrf.mxu1  ;;  %v1190_v23 = vpop.eup %1189  ;;  %755 = vst [vmem:[%s1397_s8 + $0x30] sm:$0xff] %v1188_v20  ;;  %v631_v24 = vadd.f32 %v995_v18, %v1382_v50 }
 0x11b   : > { %v695_v25 = vadd.f32 %v1043_v19, %v1382_v50  ;;  %771 = vst [vmem:[%s1397_s8 + $0xb0] sm:$0xff] %v1190_v23  ;;  %v997_v26 = vpop.f32.mrf.mxu0 }
 0x11c   : > { %v1045_v27 = vpop.f32.mrf.mxu1  ;;  %1203 = vtanh.f32 %v631_v24  ;;  %v998_v28 = vadd.f32 %v997_v26, %v996_v21 }
 0x11d   : > { %v1046_v29 = vadd.f32 %v1045_v27, %v1044_v22  ;;  %v1192_v30 = vpop.eup %1191  ;;  %1205 = vtanh.f32 %v695_v25  ;;  %v999_v31 = vpop.f32.mrf.mxu0 }
 0x11e   : > { %v1047_v32 = vpop.f32.mrf.mxu1  ;;  %v1194_v33 = vpop.eup %1193  ;;  %756 = vst [vmem:[%s1397_s8 + $0x38] sm:$0xff] %v1192_v30  ;;  %v634_v34 = vadd.f32 %v998_v28, %v1382_v50 }
 0x11f   : > { %v698_v35 = vadd.f32 %v1046_v29, %v1382_v50  ;;  %772 = vst [vmem:[%s1397_s8 + $0xb8] sm:$0xff] %v1194_v33  ;;  %v1000_v36 = vpop.f32.mrf.mxu0 }
 0x120   : > { %v1048_v37 = vpop.f32.mrf.mxu1  ;;  %1207 = vtanh.f32 %v634_v34  ;;  %v1001_v38 = vadd.f32 %v1000_v36, %v999_v31 }
 0x121   : > { %v1049_v39 = vadd.f32 %v1048_v37, %v1047_v32  ;;  %v1196_v40 = vpop.eup %1195  ;;  %1209 = vtanh.f32 %v698_v35  ;;  %v1002_v41 = vpop.f32.mrf.mxu0 }
 0x122   : > { %v1050_v42 = vpop.f32.mrf.mxu1  ;;  %v1198_v43 = vpop.eup %1197  ;;  %757 = vst [vmem:[%s1397_s8 + $0x40] sm:$0xff] %v1196_v40  ;;  %v639_v44 = vadd.f32 %v1001_v38, %v1382_v50 }
 0x123   : > { %v703_v45 = vadd.f32 %v1049_v39, %v1382_v50  ;;  %773 = vst [vmem:[%s1397_s8 + $0xc0] sm:$0xff] %v1198_v43  ;;  %v1003_v46 = vpop.f32.mrf.mxu0 }
 0x124   : > { %v1051_v47 = vpop.f32.mrf.mxu1  ;;  %1211 = vtanh.f32 %v639_v44  ;;  %v1004_v48 = vadd.f32 %v1003_v46, %v1002_v41 }
 0x125   : > { %v1052_v49 = vadd.f32 %v1051_v47, %v1050_v42  ;;  %v1200_v51 = vpop.eup %1199  ;;  %1213 = vtanh.f32 %v703_v45  ;;  %v1005_v52 = vpop.f32.mrf.mxu0 }
 0x126   : > { %v1053_v53 = vpop.f32.mrf.mxu1  ;;  %v1202_v54 = vpop.eup %1201  ;;  %758 = vst [vmem:[%s1397_s8 + $0x48] sm:$0xff] %v1200_v51  ;;  %v642_v55 = vadd.f32 %v1004_v48, %v1382_v50 }
 0x127   : > { %v706_v56 = vadd.f32 %v1052_v49, %v1382_v50  ;;  %774 = vst [vmem:[%s1397_s8 + $0xc8] sm:$0xff] %v1202_v54  ;;  %v1006_v57 = vpop.f32.mrf.mxu0 }
 0x128   : > { %v1054_v58 = vpop.f32.mrf.mxu1  ;;  %1215 = vtanh.f32 %v642_v55  ;;  %v1007_v59 = vadd.f32 %v1006_v57, %v1005_v52 }
 0x129   : > { %v1055_v60 = vadd.f32 %v1054_v58, %v1053_v53  ;;  %v1204_v61 = vpop.eup %1203  ;;  %1217 = vtanh.f32 %v706_v56  ;;  %v1008_v62 = vpop.f32.mrf.mxu0 }
 0x12a   : > { %v1056_v63 = vpop.f32.mrf.mxu1  ;;  %v1206_v0 = vpop.eup %1205  ;;  %759 = vst [vmem:[%s1397_s8 + $0x50] sm:$0xff] %v1204_v61  ;;  %v647_v1 = vadd.f32 %v1007_v59, %v1382_v50 }
 0x12b   : > { %v711_v2 = vadd.f32 %v1055_v60, %v1382_v50  ;;  %775 = vst [vmem:[%s1397_s8 + $0xd0] sm:$0xff] %v1206_v0  ;;  %v1009_v3 = vpop.f32.mrf.mxu0 }
 0x12c   : > { %v1057_v4 = vpop.f32.mrf.mxu1  ;;  %1219 = vtanh.f32 %v647_v1  ;;  %v1010_v5 = vadd.f32 %v1009_v3, %v1008_v62 }
 0x12d   : > { %v1058_v6 = vadd.f32 %v1057_v4, %v1056_v63  ;;  %v1208_v7 = vpop.eup %1207  ;;  %1221 = vtanh.f32 %v711_v2 }
 0x12e   : > { %v1210_v8 = vpop.eup %1209  ;;  %760 = vst [vmem:[%s1397_s8 + $0x58] sm:$0xff] %v1208_v7  ;;  %v650_v9 = vadd.f32 %v1010_v5, %v1382_v50 }
 0x12f   : > { %v714_v10 = vadd.f32 %v1058_v6, %v1382_v50  ;;  %776 = vst [vmem:[%s1397_s8 + $0xd8] sm:$0xff] %v1210_v8 }
 0x130   : > { %1223 = vtanh.f32 %v650_v9 }
 0x131   : > { %v1212_v11 = vpop.eup %1211  ;;  %1225 = vtanh.f32 %v714_v10 }
 0x132   : > { %v1214_v12 = vpop.eup %1213  ;;  %761 = vst [vmem:[%s1397_s8 + $0x60] sm:$0xff] %v1212_v11 }
 0x133   : > { %777 = vst [vmem:[%s1397_s8 + $0xe0] sm:$0xff] %v1214_v12 }
 0x135   : > { %v1216_v13 = vpop.eup %1215 }
 0x136   : > { %v1218_v14 = vpop.eup %1217  ;;  %762 = vst [vmem:[%s1397_s8 + $0x68] sm:$0xff] %v1216_v13 }
 0x137   : > { %778 = vst [vmem:[%s1397_s8 + $0xe8] sm:$0xff] %v1218_v14 }
 0x139   : > { %v1220_v15 = vpop.eup %1219 }
 0x13a   : > { %v1222_v16 = vpop.eup %1221  ;;  %763 = vst [vmem:[%s1397_s8 + $0x70] sm:$0xff] %v1220_v15 }
 0x13b   : > { %779 = vst [vmem:[%s1397_s8 + $0xf0] sm:$0xff] %v1222_v16 }
 0x13d   : > { %v1224_v17 = vpop.eup %1223 }
 0x13e   : > { %v1226_v18 = vpop.eup %1225  ;;  %764 = vst [vmem:[%s1397_s8 + $0x78] sm:$0xff] %v1224_v17 }
 0x13f   : > { %780 = vst [vmem:[%s1397_s8 + $0xf8] sm:$0xff] %v1226_v18 }
 0x140 PF: > { %s13_s14 = sadd.s32 1, %s1249_s14   ;;  %s1468_s12 = smov %s1245_s13 }
 0x141   : > { %p10_p5 = scmp.ge.s32.totalorder %s13_s14, 4   ;;  %s1469_s13 = smov %s1471_s15 }
 0x143   :  { %12 = sbr.rel (!%p10_p5) target bundleno = 2 (0x2), region = 68 }

</bundles_post_ra>
